<compile_context>
chip_gen: v5e
topology: v5e:2x2
jax: 0.10.0
libtpu: 0.0.40
codegen_flags: <defaults>
</compile_context>

<pallas_src>
import functools
import math

import jax
import jax.numpy as jnp
from jax.experimental import pallas as pl
from jax.experimental.pallas import tpu as pltpu


def _round_up(x, m):
    return ((x + m - 1) // m) * m


def _vmem_limit(*buf_bytes):
    """Generation-aware VMEM budget: real buffer sum + margin, capped below the
    per-core physical capacity (64 MiB on v7x, 128 MiB on v5e/v6e)."""
    total = sum(int(b) for b in buf_bytes)
    try:
        cap = int(pltpu.get_tpu_info().vmem_capacity_bytes)
    except Exception:
        cap = 64 * 1024 * 1024
    ceiling = 40 * 1024 * 1024 if cap <= 64 * 1024 * 1024 else 96 * 1024 * 1024
    want = int(total * 1.25) + 2 * 1024 * 1024
    return max(16 * 1024 * 1024, min(want, ceiling))


# ---------------------------------------------------------------------------
# Linear: y = x @ W + b, tiled over tokens (inner) and output features (outer).
# Operands stay in storage dtype (bf16) on the MXU; accumulation is f32.
# ---------------------------------------------------------------------------
def _linear_kernel(x_ref, w_ref, b_ref, o_ref):
    y = jnp.dot(x_ref[...], w_ref[...], preferred_element_type=jnp.float32)
    y = y + b_ref[...].astype(jnp.float32)
    o_ref[...] = y.astype(o_ref.dtype)


def _linear(x2, w, b, *, tm, tn, out_dtype=None):
    """x2: (M, din), w: (din, dout), b: (dout,) -> (M, dout)."""
    M, din = x2.shape
    assert w.shape[0] == din
    dout = w.shape[1]
    out_dtype = x2.dtype if out_dtype is None else out_dtype

    din_p = _round_up(din, 128)
    dout_p = _round_up(dout, 128)
    tm = min(tm, M)
    tn = min(tn, dout_p)
    if dout_p % tn:
        tn = math.gcd(tn, dout_p)        # both are multiples of 128

    x_p = jnp.pad(x2, ((0, 0), (0, din_p - din))) if din_p != din else x2
    w_p = jnp.pad(w, ((0, din_p - din), (0, dout_p - dout)))
    b_p = jnp.pad(b.astype(jnp.float32), (0, dout_p - dout)).reshape(1, dout_p)

    isz = jnp.dtype(x_p.dtype).itemsize
    osz = jnp.dtype(out_dtype).itemsize
    cost = pl.CostEstimate(
        flops=2 * M * din_p * dout_p,
        transcendentals=0,
        bytes_accessed=(M * din_p + din_p * dout_p) * isz + dout_p * 4
        + M * dout_p * osz,
    )
    vmem = _vmem_limit(
        2 * tm * din_p * isz,            # x tiles (double-buffered)
        din_p * tn * isz,                # W tile
        tn * 4,                          # bias tile
        2 * tm * tn * osz,               # out tiles
        tm * tn * 4,                     # f32 accumulator
    )

    grid = (dout_p // tn, pl.cdiv(M, tm))     # (j: out features, i: tokens)

    # Resident weight/bias: single-buffer them when their block index never
    # changes; default double-buffering otherwise (wide dout on v7x).
    if grid[0] == 1:
        w_spec = pl.BlockSpec((din_p, tn), lambda j, i: (0, j),
                              pipeline_mode=pl.Buffered(1))
        b_spec = pl.BlockSpec((1, tn), lambda j, i: (0, j),
                              pipeline_mode=pl.Buffered(1))
    else:
        w_spec = pl.BlockSpec((din_p, tn), lambda j, i: (0, j))
        b_spec = pl.BlockSpec((1, tn), lambda j, i: (0, j))

    out = pl.pallas_call(
        _linear_kernel,
        out_shape=jax.ShapeDtypeStruct((M, dout_p), out_dtype),
        grid_spec=pltpu.PrefetchScalarGridSpec(
            num_scalar_prefetch=0,
            grid=grid,
            in_specs=[
                pl.BlockSpec((tm, din_p), lambda j, i: (i, 0)),
                w_spec,
                b_spec,
            ],
            out_specs=pl.BlockSpec((tm, tn), lambda j, i: (i, j)),
        ),
        compiler_params=pltpu.CompilerParams(
            dimension_semantics=("parallel", "parallel"),
            vmem_limit_bytes=vmem),
        cost_estimate=cost,
    )(x_p, w_p, b_p)
    return out if dout_p == dout else out[:, :dout]


# ---------------------------------------------------------------------------
# Fused multi-head attention.  Input is the qkv buffer (B, N, 3*Cp) with the
# q / k / v column groups at Cp-aligned lane offsets (q already scaled).
# Grid: (batch, query tiles, kv tiles); kv axis innermost + "arbitrary" with
# flash-style online softmax (m/l/acc scratch).  All heads per grid step.
# Output: (B, N, Cp) in the token-major head-concat layout (padding lanes = 0).
# ---------------------------------------------------------------------------
def _mha_kernel(q_ref, k_ref, v_ref, o_ref, m_sc, l_sc, acc_sc, *,
                heads, head_dim, dim, kv_len, block_k, mask_tail):
    ki = pl.program_id(2)

    @pl.when(ki == 0)
    def _init():
        m_sc[...] = jnp.full(m_sc.shape, -jnp.inf, dtype=m_sc.dtype)
        l_sc[...] = jnp.zeros(l_sc.shape, dtype=l_sc.dtype)
        acc_sc[...] = jnp.zeros(acc_sc.shape, dtype=acc_sc.dtype)

    q_slab = q_ref[0]        # (tq, Cp) bf16, softmax scale pre-folded into W_q
    k_slab = k_ref[0]        # (tk, Cp) bf16
    v_slab = v_ref[0]        # (tk, Cp) bf16

    if mask_tail:
        kpos = ki * block_k + jax.lax.broadcasted_iota(jnp.int32, (1, block_k), 1)
        kmask = kpos < kv_len                                   # (1, tk)

    for h in range(heads):                                      # static unroll
        lo, hi = h * head_dim, (h + 1) * head_dim
        qh = q_slab[:, lo:hi]                                   # (tq, Dh)
        kh = k_slab[:, lo:hi]                                   # (tk, Dh)
        vh = v_slab[:, lo:hi]                                   # (tk, Dh)

        # scores = q_h @ k_h^T  (bf16 operands, f32 accumulation)
        s = jax.lax.dot_general(qh, kh, (((1,), (1,)), ((), ())),
                                preferred_element_type=jnp.float32)   # (tq, tk)
        if mask_tail:
            s = jnp.where(kmask, s, -jnp.inf)

        m_prev = m_sc[h]                                        # (tq, 1)
        m_new = jnp.maximum(m_prev, jnp.max(s, axis=-1, keepdims=True))
        alpha = jnp.exp(m_prev - m_new)
        p = jnp.exp(s - m_new)                                  # (tq, tk) f32
        l_sc[h] = alpha * l_sc[h] + jnp.sum(p, axis=-1, keepdims=True)
        acc_sc[h] = alpha * acc_sc[h] + jnp.dot(
            p.astype(vh.dtype), vh, preferred_element_type=jnp.float32)
        m_sc[h] = m_new
        # attn_drop -> identity (eval mode)

    @pl.when(ki == pl.num_programs(2) - 1)
    def _finalize():
        tq, cp = o_ref.shape[1], o_ref.shape[2]
        if cp > dim:                 # exact zeros in the lane-padding columns
            o_ref[0] = jnp.zeros((tq, cp), o_ref.dtype)
        for h in range(heads):
            lo, hi = h * head_dim, (h + 1) * head_dim
            inv_l = pl.reciprocal(l_sc[h], approx=True)   # deferred softmax norm
            o_ref[0, :, lo:hi] = (acc_sc[h] * inv_l).astype(o_ref.dtype)


def _attention(qkv, *, heads, head_dim, dim, tq, tk):
    B, N, three_cp = qkv.shape
    Cp = three_cp // 3
    tq = min(tq, N)
    tk = min(tk, N)
    nq = pl.cdiv(N, tq)
    nk = pl.cdiv(N, tk)
    mask_tail = (nk * tk) != N

    isz = jnp.dtype(qkv.dtype).itemsize
    cost = pl.CostEstimate(
        flops=4 * B * heads * N * N * head_dim,
        transcendentals=B * heads * N * N,
        bytes_accessed=(B * N * Cp + 2 * B * nq * N * Cp + B * N * Cp) * isz,
    )
    vmem = _vmem_limit(
        2 * tq * Cp * isz,                  # q tiles
        2 * 2 * tk * Cp * isz,              # k / v tiles
        2 * tq * Cp * isz,                  # out tiles
        heads * tq * (2 + head_dim) * 4,    # m / l / acc scratch
        2 * tq * tk * 4,                    # f32 score / prob temporaries
    )

    kernel = functools.partial(
        _mha_kernel, heads=heads, head_dim=head_dim, dim=dim,
        kv_len=N, block_k=tk, mask_tail=mask_tail)

    return pl.pallas_call(
        kernel,
        out_shape=jax.ShapeDtypeStruct((B, N, Cp), qkv.dtype),
        grid_spec=pltpu.PrefetchScalarGridSpec(
            num_scalar_prefetch=0,
            grid=(B, nq, nk),
            in_specs=[
                pl.BlockSpec((1, tq, Cp), lambda b, qi, ki: (b, qi, 0)),  # q
                pl.BlockSpec((1, tk, Cp), lambda b, qi, ki: (b, ki, 1)),  # k
                pl.BlockSpec((1, tk, Cp), lambda b, qi, ki: (b, ki, 2)),  # v
            ],
            out_specs=pl.BlockSpec((1, tq, Cp), lambda b, qi, ki: (b, qi, 0)),
            scratch_shapes=[
                pltpu.VMEM((heads, tq, 1), jnp.float32),          # m
                pltpu.VMEM((heads, tq, 1), jnp.float32),          # l
                pltpu.VMEM((heads, tq, head_dim), jnp.float32),   # acc
            ],
        ),
        compiler_params=pltpu.CompilerParams(
            dimension_semantics=("parallel", "parallel", "arbitrary"),
            vmem_limit_bytes=vmem),
        cost_estimate=cost,
    )(qkv, qkv, qkv)


# ---------------------------------------------------------------------------
# Full module forward (eval mode).  Weights are (in, out) layout
# (pre-transposed relative to PyTorch nn.Linear's (out, in)).
# ---------------------------------------------------------------------------
@functools.partial(jax.jit,
                   static_argnames=("heads", "tm", "tn", "tq", "tk",
                                    "compute_dtype"))
def attention_forward(x, w_qkv, b_qkv, w_proj, b_proj, *, heads,
                      tm=512, tn=512, tq=256, tk=512,
                      compute_dtype=jnp.bfloat16):
    B, N, C = x.shape
    head_dim = C // heads
    scale = float(head_dim) ** -0.5
    Cp = _round_up(C, 128)
    M = B * N
    cd = jnp.dtype(compute_dtype)

    # ---- static weight prep (done once at init in a real model) ------------
    #  * softmax scale folded into the q columns (free at runtime)
    #  * q/k/v groups placed at Cp-aligned offsets -> qkv kernel output feeds
    #    the attention kernel's BlockSpecs directly (no activation transposes)
    #  * weights cast to bf16 so the MXU runs its fast path (f32 accumulation)
    w_qkv_g = jnp.zeros((C, 3 * Cp), cd)
    w_qkv_g = w_qkv_g.at[:, :C].set((w_qkv[:, :C] * scale).astype(cd))
    w_qkv_g = w_qkv_g.at[:, Cp:Cp + C].set(w_qkv[:, C:2 * C].astype(cd))
    w_qkv_g = w_qkv_g.at[:, 2 * Cp:2 * Cp + C].set(w_qkv[:, 2 * C:].astype(cd))
    b_qkv_g = jnp.zeros((3 * Cp,), jnp.float32)
    b_qkv_g = b_qkv_g.at[:C].set(b_qkv[:C] * scale)
    b_qkv_g = b_qkv_g.at[Cp:Cp + C].set(b_qkv[C:2 * C])
    b_qkv_g = b_qkv_g.at[2 * Cp:2 * Cp + C].set(b_qkv[2 * C:])
    # proj weight gets zero rows for the attention output's padding lanes
    w_proj_g = jnp.zeros((Cp, C), cd).at[:C, :].set(w_proj.astype(cd))

    x2 = x.reshape(M, C).astype(cd)

    # qkv projection -> (B, N, 3*Cp) bf16, groups [q | k | v], each Cp wide
    qkv = _linear(x2, w_qkv_g, b_qkv_g, tm=tm, tn=tn)
    qkv = qkv.reshape(B, N, 3 * Cp)

    # fused multi-head attention (all heads per step, flash KV tiling,
    # deferred normalization); attn_drop is identity in eval mode
    ctx = _attention(qkv, heads=heads, head_dim=head_dim, dim=C, tq=tq, tk=tk)

    # output projection (proj_drop identity in eval mode), f32 result
    y = _linear(ctx.reshape(M, Cp), w_proj_g, b_proj, tm=tm, tn=tn,
                out_dtype=x.dtype)
    return y.reshape(B, N, C)


def init_params(key, dim):
    """nn.Linear-style uniform(+-1/sqrt(fan_in)) init; weights stored (in, out)."""
    k1, k2, k3, k4 = jax.random.split(key, 4)
    bound = 1.0 / float(jnp.sqrt(dim))
    w_qkv = jax.random.uniform(k1, (dim, 3 * dim), jnp.float32, -bound, bound)
    b_qkv = jax.random.uniform(k2, (3 * dim,), jnp.float32, -bound, bound)
    w_proj = jax.random.uniform(k3, (dim, dim), jnp.float32, -bound, bound)
    b_proj = jax.random.uniform(k4, (dim,), jnp.float32, -bound, bound)
    return w_qkv, b_qkv, w_proj, b_proj


if __name__ == "__main__":
    # Module config: Attention(dim=16, heads=4, dropout=0.1); x: (B=2, N=8, C=16)
    B, N, dim, heads = 2, 8, 16, 4
    head_dim = dim // heads

    key = jax.random.PRNGKey(0)
    kx, kp = jax.random.split(key)
    x = jax.random.normal(kx, (B, N, dim), dtype=jnp.float32)
    w_qkv, b_qkv, w_proj, b_proj = init_params(kp, dim)

    out = attention_forward(x, w_qkv, b_qkv, w_proj, b_proj, heads=heads)
    out = jax.block_until_ready(out)

    # Pure-JAX reference mirroring the PyTorch eval-mode forward.  Matmul
    # operands are cast to bf16 at the same boundaries as the kernels
    # (bf16 MXU operands, f32 accumulation); everything else stays f32.
    cd, f32 = jnp.bfloat16, jnp.float32
    xb = x.astype(cd).astype(f32)
    wqkv = w_qkv.astype(cd).astype(f32)
    wproj = w_proj.astype(cd).astype(f32)
    qkv = jnp.einsum("bnc,cd->bnd", xb, wqkv) + b_qkv
    qkv = jnp.transpose(qkv.reshape(B, N, 3, heads, head_dim), (2, 0, 3, 1, 4))
    q, k, v = (t.astype(cd).astype(f32) for t in (qkv[0], qkv[1], qkv[2]))
    attn = jnp.einsum("bhnd,bhmd->bhnm", q, k) * (head_dim ** -0.5)
    attn = jax.nn.softmax(attn, axis=-1).astype(cd).astype(f32)
    ctx = jnp.einsum("bhnm,bhmd->bhnd", attn, v).astype(cd).astype(f32)
    ctx = jnp.transpose(ctx, (0, 2, 1, 3)).reshape(B, N, dim)
    ref = jnp.einsum("bnc,cd->bnd", ctx, wproj) + b_proj

    assert out.shape == (B, N, dim)
    max_err = float(jnp.max(jnp.abs(out - ref)))
    assert jnp.allclose(out, ref, atol=3e-2, rtol=3e-2), \
        f"mismatch vs reference, max err {max_err}"

    print("KERNEL_OK")
</pallas_src>

<mosaic_0001>
module attributes {stable_mosaic.version = 11 : i64} {
  func.func @_linear_kernel(%arg0: i32, %arg1: i32, %arg2: memref<16x128xbf16, #tpu.memory_space<vmem>>, %arg3: memref<128x384xbf16, #tpu.memory_space<vmem>>, %arg4: memref<1x384xf32, #tpu.memory_space<vmem>>, %arg5: memref<16x384xbf16, #tpu.memory_space<vmem>>) attributes {dimension_semantics = [#tpu.dimension_semantics<parallel>, #tpu.dimension_semantics<parallel>], iteration_bounds = array<i64: 1, 1>, scalar_prefetch = 0 : i64, scratch_operands = 0 : i64, tpu.core_type = #tpu.core_type<tc>, window_params = [{transform_indices = @transform_0, window_bounds = array<i64: 16, 128>}, {pipeline_mode = #tpu.pipeline_mode<synchronous>, transform_indices = @transform_1, window_bounds = array<i64: 128, 384>}, {pipeline_mode = #tpu.pipeline_mode<synchronous>, transform_indices = @transform_2, window_bounds = array<i64: 1, 384>}, {transform_indices = @transform_3, window_bounds = array<i64: 16, 384>}]} {
    %c0 = arith.constant 0 : index
    %c0_0 = arith.constant 0 : index
    %0 = vector.load %arg2[%c0, %c0_0] : memref<16x128xbf16, #tpu.memory_space<vmem>>, vector<16x128xbf16>
    %c0_1 = arith.constant 0 : index
    %c0_2 = arith.constant 0 : index
    %1 = vector.load %arg3[%c0_1, %c0_2] : memref<128x384xbf16, #tpu.memory_space<vmem>>, vector<128x384xbf16>
    %cst = arith.constant dense<0.000000e+00> : vector<16x384xf32>
    %2 = tpu.matmul %0, %1, %cst {dimension_numbers = #tpu.dot_dimension_numbers<[1], [0], [0], [1], [0, 0, 1, 1], [], []>} : vector<16x128xbf16>, vector<128x384xbf16>, vector<16x384xf32> -> vector<16x384xf32>
    %c0_3 = arith.constant 0 : index
    %c0_4 = arith.constant 0 : index
    %3 = vector.load %arg4[%c0_3, %c0_4] : memref<1x384xf32, #tpu.memory_space<vmem>>, vector<1x384xf32>
    %4 = vector.broadcast %3 : vector<1x384xf32> to vector<16x384xf32>
    %5 = arith.addf %2, %4 : vector<16x384xf32>
    %6 = arith.truncf %5 : vector<16x384xf32> to vector<16x384xbf16>
    %c0_5 = arith.constant 0 : index
    %c0_6 = arith.constant 0 : index
    %7 = vector.load %arg5[%c0_5, %c0_6] : memref<16x384xbf16, #tpu.memory_space<vmem>>, vector<16x384xbf16>
    tpu.vector_store %arg5[%c0_5, %c0_6], %6 {strides = array<i32>} : memref<16x384xbf16, #tpu.memory_space<vmem>>, vector<16x384xbf16>,
    return
  }
  func.func @transform_0(%arg0: i32, %arg1: i32) -> (i32, i32) {
    %c0_i32 = arith.constant 0 : i32
    %c0_i32_0 = arith.constant 0 : i32
    return %arg1, %c0_i32 : i32, i32
  }
  func.func @transform_1(%arg0: i32, %arg1: i32) -> (i32, i32) {
    %c0_i32 = arith.constant 0 : i32
    %c0_i32_0 = arith.constant 0 : i32
    return %c0_i32, %arg0 : i32, i32
  }
  func.func @transform_2(%arg0: i32, %arg1: i32) -> (i32, i32) {
    %c0_i32 = arith.constant 0 : i32
    %c0_i32_0 = arith.constant 0 : i32
    return %c0_i32, %arg0 : i32, i32
  }
  func.func @transform_3(%arg0: i32, %arg1: i32) -> (i32, i32) {
    %c0_i32 = arith.constant 0 : i32
    return %arg1, %arg0 : i32, i32
  }
}

module attributes {stable_mosaic.version = 11 : i64} {
  func.func @_linear_kernel(%arg0: i32, %arg1: i32, %arg2: memref<16x128xbf16, #tpu.memory_space<vmem>>, %arg3: memref<128x128xbf16, #tpu.memory_space<vmem>>, %arg4: memref<1x128xf32, #tpu.memory_space<vmem>>, %arg5: memref<16x128xf32, #tpu.memory_space<vmem>>) attributes {dimension_semantics = [#tpu.dimension_semantics<parallel>, #tpu.dimension_semantics<parallel>], iteration_bounds = array<i64: 1, 1>, scalar_prefetch = 0 : i64, scratch_operands = 0 : i64, tpu.core_type = #tpu.core_type<tc>, window_params = [{transform_indices = @transform_0, window_bounds = array<i64: 16, 128>}, {pipeline_mode = #tpu.pipeline_mode<synchronous>, transform_indices = @transform_1, window_bounds = array<i64: 128, 128>}, {pipeline_mode = #tpu.pipeline_mode<synchronous>, transform_indices = @transform_2, window_bounds = array<i64: 1, 128>}, {transform_indices = @transform_3, window_bounds = array<i64: 16, 128>}]} {
    %c0 = arith.constant 0 : index
    %c0_0 = arith.constant 0 : index
    %0 = vector.load %arg2[%c0, %c0_0] : memref<16x128xbf16, #tpu.memory_space<vmem>>, vector<16x128xbf16>
    %c0_1 = arith.constant 0 : index
    %c0_2 = arith.constant 0 : index
    %1 = vector.load %arg3[%c0_1, %c0_2] : memref<128x128xbf16, #tpu.memory_space<vmem>>, vector<128x128xbf16>
    %cst = arith.constant dense<0.000000e+00> : vector<16x128xf32>
    %2 = tpu.matmul %0, %1, %cst {dimension_numbers = #tpu.dot_dimension_numbers<[1], [0], [0], [1], [0, 0, 1, 1], [], []>} : vector<16x128xbf16>, vector<128x128xbf16>, vector<16x128xf32> -> vector<16x128xf32>
    %c0_3 = arith.constant 0 : index
    %c0_4 = arith.constant 0 : index
    %3 = vector.load %arg4[%c0_3, %c0_4] : memref<1x128xf32, #tpu.memory_space<vmem>>, vector<1x128xf32>
    %4 = vector.broadcast %3 : vector<1x128xf32> to vector<16x128xf32>
    %5 = arith.addf %2, %4 : vector<16x128xf32>
    %c0_5 = arith.constant 0 : index
    %c0_6 = arith.constant 0 : index
    %6 = vector.load %arg5[%c0_5, %c0_6] : memref<16x128xf32, #tpu.memory_space<vmem>>, vector<16x128xf32>
    tpu.vector_store %arg5[%c0_5, %c0_6], %5 {strides = array<i32>} : memref<16x128xf32, #tpu.memory_space<vmem>>, vector<16x128xf32>,
    return
  }
  func.func @transform_0(%arg0: i32, %arg1: i32) -> (i32, i32) {
    %c0_i32 = arith.constant 0 : i32
    %c0_i32_0 = arith.constant 0 : i32
    return %arg1, %c0_i32 : i32, i32
  }
  func.func @transform_1(%arg0: i32, %arg1: i32) -> (i32, i32) {
    %c0_i32 = arith.constant 0 : i32
    %c0_i32_0 = arith.constant 0 : i32
    return %c0_i32, %arg0 : i32, i32
  }
  func.func @transform_2(%arg0: i32, %arg1: i32) -> (i32, i32) {
    %c0_i32 = arith.constant 0 : i32
    %c0_i32_0 = arith.constant 0 : i32
    return %c0_i32, %arg0 : i32, i32
  }
  func.func @transform_3(%arg0: i32, %arg1: i32) -> (i32, i32) {
    %c0_i32 = arith.constant 0 : i32
    return %arg1, %arg0 : i32, i32
  }
}

module attributes {stable_mosaic.version = 11 : i64} {
  func.func @_mha_kernel(%arg0: i32, %arg1: i32, %arg2: i32, %arg3: memref<1x8x128xbf16, #tpu.memory_space<vmem>>, %arg4: memref<1x8x128xbf16, #tpu.memory_space<vmem>>, %arg5: memref<1x8x128xbf16, #tpu.memory_space<vmem>>, %arg6: memref<1x8x128xbf16, #tpu.memory_space<vmem>>, %arg7: memref<4x8x1xf32, #tpu.memory_space<vmem>>, %arg8: memref<4x8x1xf32, #tpu.memory_space<vmem>>, %arg9: memref<4x8x4xf32, #tpu.memory_space<vmem>>) attributes {dimension_semantics = [#tpu.dimension_semantics<parallel>, #tpu.dimension_semantics<parallel>, #tpu.dimension_semantics<arbitrary>], iteration_bounds = array<i64: 2, 1, 1>, scalar_prefetch = 0 : i64, scratch_operands = 3 : i64, tpu.core_type = #tpu.core_type<tc>, window_params = [{transform_indices = @transform_0, window_bounds = array<i64: 1, 8, 128>}, {transform_indices = @transform_1, window_bounds = array<i64: 1, 8, 128>}, {transform_indices = @transform_2, window_bounds = array<i64: 1, 8, 128>}, {transform_indices = @transform_3, window_bounds = array<i64: 1, 8, 128>}]} {
    %c0_i32 = arith.constant 0 : i32
    %0 = arith.cmpi eq, %arg2, %c0_i32 : i32
    %1 = arith.extui %0 : i1 to i32
    %c0_i32_0 = arith.constant 0 : i32
    %2 = arith.cmpi ne, %1, %c0_i32_0 : i32
    scf.if %2 {
      %cst_95 = arith.constant 0xFF800000 : f32
      %156 = vector.broadcast %cst_95 : f32 to vector<4x8x1xf32>
      %c0_96 = arith.constant 0 : index
      %c0_97 = arith.constant 0 : index
      %c0_98 = arith.constant 0 : index
      %157 = vector.load %arg7[%c0_96, %c0_97, %c0_98] : memref<4x8x1xf32, #tpu.memory_space<vmem>>, vector<4x8x1xf32>
      tpu.vector_store %arg7[%c0_96, %c0_97, %c0_98], %156 {strides = array<i32>} : memref<4x8x1xf32, #tpu.memory_space<vmem>>, vector<4x8x1xf32>,
      %cst_99 = arith.constant 0.000000e+00 : f32
      %158 = vector.broadcast %cst_99 : f32 to vector<4x8x1xf32>
      %c0_100 = arith.constant 0 : index
      %c0_101 = arith.constant 0 : index
      %c0_102 = arith.constant 0 : index
      %159 = vector.load %arg8[%c0_100, %c0_101, %c0_102] : memref<4x8x1xf32, #tpu.memory_space<vmem>>, vector<4x8x1xf32>
      tpu.vector_store %arg8[%c0_100, %c0_101, %c0_102], %158 {strides = array<i32>} : memref<4x8x1xf32, #tpu.memory_space<vmem>>, vector<4x8x1xf32>,
      %cst_103 = arith.constant 0.000000e+00 : f32
      %160 = vector.broadcast %cst_103 : f32 to vector<4x8x4xf32>
      %c0_104 = arith.constant 0 : index
      %c0_105 = arith.constant 0 : index
      %c0_106 = arith.constant 0 : index
      %161 = vector.load %arg9[%c0_104, %c0_105, %c0_106] : memref<4x8x4xf32, #tpu.memory_space<vmem>>, vector<4x8x4xf32>
      tpu.vector_store %arg9[%c0_104, %c0_105, %c0_106], %160 {strides = array<i32>} : memref<4x8x4xf32, #tpu.memory_space<vmem>>, vector<4x8x4xf32>,
    } else {
    }
    %c0 = arith.constant 0 : index
    %c0_1 = arith.constant 0 : index
    %c0_2 = arith.constant 0 : index
    %3 = vector.load %arg3[%c0, %c0_1, %c0_2] : memref<1x8x128xbf16, #tpu.memory_space<vmem>>, vector<1x8x128xbf16>
    %4 = vector.shape_cast %3 : vector<1x8x128xbf16> to vector<8x128xbf16>
    %c0_3 = arith.constant 0 : index
    %c0_4 = arith.constant 0 : index
    %c0_5 = arith.constant 0 : index
    %5 = vector.load %arg4[%c0_3, %c0_4, %c0_5] : memref<1x8x128xbf16, #tpu.memory_space<vmem>>, vector<1x8x128xbf16>
    %6 = vector.shape_cast %5 : vector<1x8x128xbf16> to vector<8x128xbf16>
    %c0_6 = arith.constant 0 : index
    %c0_7 = arith.constant 0 : index
    %c0_8 = arith.constant 0 : index
    %7 = vector.load %arg5[%c0_6, %c0_7, %c0_8] : memref<1x8x128xbf16, #tpu.memory_space<vmem>>, vector<1x8x128xbf16>
    %8 = vector.shape_cast %7 : vector<1x8x128xbf16> to vector<8x128xbf16>
    %9 = vector.extract_strided_slice %4 {offsets = [0, 0], sizes = [8, 4], strides = [1, 1]} : vector<8x128xbf16> to vector<8x4xbf16>
    %10 = vector.extract_strided_slice %6 {offsets = [0, 0], sizes = [8, 4], strides = [1, 1]} : vector<8x128xbf16> to vector<8x4xbf16>
    %11 = vector.extract_strided_slice %8 {offsets = [0, 0], sizes = [8, 4], strides = [1, 1]} : vector<8x128xbf16> to vector<8x4xbf16>
    %cst = arith.constant dense<0.000000e+00> : vector<8x8xf32>
    %12 = tpu.matmul %9, %10, %cst {dimension_numbers = #tpu.dot_dimension_numbers<[1], [1], [0], [0], [0, 0, 1, 0], [], []>} : vector<8x4xbf16>, vector<8x4xbf16>, vector<8x8xf32> -> vector<8x8xf32>
    %c0_9 = arith.constant 0 : index
    %c0_10 = arith.constant 0 : index
    %c0_11 = arith.constant 0 : index
    %13 = vector.load %arg7[%c0_9, %c0_10, %c0_11] : memref<4x8x1xf32, #tpu.memory_space<vmem>>, vector<1x8x1xf32>
    %14 = vector.shape_cast %13 : vector<1x8x1xf32> to vector<8x1xf32>
    %cst_12 = arith.constant dense<0xFF800000> : vector<8xf32>
    %15 = vector.multi_reduction <maximumf>, %12, %cst_12 [1] : vector<8x8xf32> to vector<8xf32>
    %16 = vector.shape_cast %15 : vector<8xf32> to vector<8x1xf32>
    %17 = arith.maximumf %14, %16 : vector<8x1xf32>
    %18 = arith.subf %14, %17 : vector<8x1xf32>
    %19 = math.exp %18 : vector<8x1xf32>
    %20 = vector.broadcast %17 : vector<8x1xf32> to vector<8x8xf32>
    %21 = arith.subf %12, %20 : vector<8x8xf32>
    %22 = math.exp %21 : vector<8x8xf32>
    %c0_13 = arith.constant 0 : index
    %c0_14 = arith.constant 0 : index
    %c0_15 = arith.constant 0 : index
    %23 = vector.load %arg8[%c0_13, %c0_14, %c0_15] : memref<4x8x1xf32, #tpu.memory_space<vmem>>, vector<1x8x1xf32>
    %24 = vector.shape_cast %23 : vector<1x8x1xf32> to vector<8x1xf32>
    %25 = arith.mulf %19, %24 : vector<8x1xf32>
    %cst_16 = arith.constant dense<0.000000e+00> : vector<8xf32>
    %26 = vector.multi_reduction <add>, %22, %cst_16 [1] : vector<8x8xf32> to vector<8xf32>
    %27 = vector.shape_cast %26 : vector<8xf32> to vector<8x1xf32>
    %28 = arith.addf %25, %27 : vector<8x1xf32>
    %c0_17 = arith.constant 0 : index
    %c0_18 = arith.constant 0 : index
    %c0_19 = arith.constant 0 : index
    %29 = vector.load %arg8[%c0_17, %c0_18, %c0_19] : memref<4x8x1xf32, #tpu.memory_space<vmem>>, vector<1x8x1xf32>
    %30 = vector.shape_cast %29 : vector<1x8x1xf32> to vector<8x1xf32>
    %31 = vector.shape_cast %28 : vector<8x1xf32> to vector<1x8x1xf32>
    tpu.vector_store %arg8[%c0_17, %c0_18, %c0_19], %31 {strides = array<i32>} : memref<4x8x1xf32, #tpu.memory_space<vmem>>, vector<1x8x1xf32>,
    %c0_20 = arith.constant 0 : index
    %c0_21 = arith.constant 0 : index
    %c0_22 = arith.constant 0 : index
    %32 = vector.load %arg9[%c0_20, %c0_21, %c0_22] : memref<4x8x4xf32, #tpu.memory_space<vmem>>, vector<1x8x4xf32>
    %33 = vector.shape_cast %32 : vector<1x8x4xf32> to vector<8x4xf32>
    %34 = vector.broadcast %19 : vector<8x1xf32> to vector<8x4xf32>
    %35 = arith.mulf %34, %33 : vector<8x4xf32>
    %36 = arith.truncf %22 : vector<8x8xf32> to vector<8x8xbf16>
    %cst_23 = arith.constant dense<0.000000e+00> : vector<8x4xf32>
    %37 = tpu.matmul %36, %11, %cst_23 {dimension_numbers = #tpu.dot_dimension_numbers<[1], [0], [0], [1], [0, 0, 1, 1], [], []>} : vector<8x8xbf16>, vector<8x4xbf16>, vector<8x4xf32> -> vector<8x4xf32>
    %38 = arith.addf %35, %37 : vector<8x4xf32>
    %c0_24 = arith.constant 0 : index
    %c0_25 = arith.constant 0 : index
    %c0_26 = arith.constant 0 : index
    %39 = vector.load %arg9[%c0_24, %c0_25, %c0_26] : memref<4x8x4xf32, #tpu.memory_space<vmem>>, vector<1x8x4xf32>
    %40 = vector.shape_cast %39 : vector<1x8x4xf32> to vector<8x4xf32>
    %41 = vector.shape_cast %38 : vector<8x4xf32> to vector<1x8x4xf32>
    tpu.vector_store %arg9[%c0_24, %c0_25, %c0_26], %41 {strides = array<i32>} : memref<4x8x4xf32, #tpu.memory_space<vmem>>, vector<1x8x4xf32>,
    %c0_27 = arith.constant 0 : index
    %c0_28 = arith.constant 0 : index
    %c0_29 = arith.constant 0 : index
    %42 = vector.load %arg7[%c0_27, %c0_28, %c0_29] : memref<4x8x1xf32, #tpu.memory_space<vmem>>, vector<1x8x1xf32>
    %43 = vector.shape_cast %42 : vector<1x8x1xf32> to vector<8x1xf32>
    %44 = vector.shape_cast %17 : vector<8x1xf32> to vector<1x8x1xf32>
    tpu.vector_store %arg7[%c0_27, %c0_28, %c0_29], %44 {strides = array<i32>} : memref<4x8x1xf32, #tpu.memory_space<vmem>>, vector<1x8x1xf32>,
    %45 = vector.extract_strided_slice %4 {offsets = [0, 4], sizes = [8, 4], strides = [1, 1]} : vector<8x128xbf16> to vector<8x4xbf16>
    %46 = vector.extract_strided_slice %6 {offsets = [0, 4], sizes = [8, 4], strides = [1, 1]} : vector<8x128xbf16> to vector<8x4xbf16>
    %47 = vector.extract_strided_slice %8 {offsets = [0, 4], sizes = [8, 4], strides = [1, 1]} : vector<8x128xbf16> to vector<8x4xbf16>
    %cst_30 = arith.constant dense<0.000000e+00> : vector<8x8xf32>
    %48 = tpu.matmul %45, %46, %cst_30 {dimension_numbers = #tpu.dot_dimension_numbers<[1], [1], [0], [0], [0, 0, 1, 0], [], []>} : vector<8x4xbf16>, vector<8x4xbf16>, vector<8x8xf32> -> vector<8x8xf32>
    %c1 = arith.constant 1 : index
    %c0_31 = arith.constant 0 : index
    %c0_32 = arith.constant 0 : index
    %49 = vector.load %arg7[%c1, %c0_31, %c0_32] : memref<4x8x1xf32, #tpu.memory_space<vmem>>, vector<1x8x1xf32>
    %50 = vector.shape_cast %49 : vector<1x8x1xf32> to vector<8x1xf32>
    %cst_33 = arith.constant dense<0xFF800000> : vector<8xf32>
    %51 = vector.multi_reduction <maximumf>, %48, %cst_33 [1] : vector<8x8xf32> to vector<8xf32>
    %52 = vector.shape_cast %51 : vector<8xf32> to vector<8x1xf32>
    %53 = arith.maximumf %50, %52 : vector<8x1xf32>
    %54 = arith.subf %50, %53 : vector<8x1xf32>
    %55 = math.exp %54 : vector<8x1xf32>
    %56 = vector.broadcast %53 : vector<8x1xf32> to vector<8x8xf32>
    %57 = arith.subf %48, %56 : vector<8x8xf32>
    %58 = math.exp %57 : vector<8x8xf32>
    %c1_34 = arith.constant 1 : index
    %c0_35 = arith.constant 0 : index
    %c0_36 = arith.constant 0 : index
    %59 = vector.load %arg8[%c1_34, %c0_35, %c0_36] : memref<4x8x1xf32, #tpu.memory_space<vmem>>, vector<1x8x1xf32>
    %60 = vector.shape_cast %59 : vector<1x8x1xf32> to vector<8x1xf32>
    %61 = arith.mulf %55, %60 : vector<8x1xf32>
    %cst_37 = arith.constant dense<0.000000e+00> : vector<8xf32>
    %62 = vector.multi_reduction <add>, %58, %cst_37 [1] : vector<8x8xf32> to vector<8xf32>
    %63 = vector.shape_cast %62 : vector<8xf32> to vector<8x1xf32>
    %64 = arith.addf %61, %63 : vector<8x1xf32>
    %c1_38 = arith.constant 1 : index
    %c0_39 = arith.constant 0 : index
    %c0_40 = arith.constant 0 : index
    %65 = vector.load %arg8[%c1_38, %c0_39, %c0_40] : memref<4x8x1xf32, #tpu.memory_space<vmem>>, vector<1x8x1xf32>
    %66 = vector.shape_cast %65 : vector<1x8x1xf32> to vector<8x1xf32>
    %67 = vector.shape_cast %64 : vector<8x1xf32> to vector<1x8x1xf32>
    tpu.vector_store %arg8[%c1_38, %c0_39, %c0_40], %67 {strides = array<i32>} : memref<4x8x1xf32, #tpu.memory_space<vmem>>, vector<1x8x1xf32>,
    %c1_41 = arith.constant 1 : index
    %c0_42 = arith.constant 0 : index
    %c0_43 = arith.constant 0 : index
    %68 = vector.load %arg9[%c1_41, %c0_42, %c0_43] : memref<4x8x4xf32, #tpu.memory_space<vmem>>, vector<1x8x4xf32>
    %69 = vector.shape_cast %68 : vector<1x8x4xf32> to vector<8x4xf32>
    %70 = vector.broadcast %55 : vector<8x1xf32> to vector<8x4xf32>
    %71 = arith.mulf %70, %69 : vector<8x4xf32>
    %72 = arith.truncf %58 : vector<8x8xf32> to vector<8x8xbf16>
    %cst_44 = arith.constant dense<0.000000e+00> : vector<8x4xf32>
    %73 = tpu.matmul %72, %47, %cst_44 {dimension_numbers = #tpu.dot_dimension_numbers<[1], [0], [0], [1], [0, 0, 1, 1], [], []>} : vector<8x8xbf16>, vector<8x4xbf16>, vector<8x4xf32> -> vector<8x4xf32>
    %74 = arith.addf %71, %73 : vector<8x4xf32>
    %c1_45 = arith.constant 1 : index
    %c0_46 = arith.constant 0 : index
    %c0_47 = arith.constant 0 : index
    %75 = vector.load %arg9[%c1_45, %c0_46, %c0_47] : memref<4x8x4xf32, #tpu.memory_space<vmem>>, vector<1x8x4xf32>
    %76 = vector.shape_cast %75 : vector<1x8x4xf32> to vector<8x4xf32>
    %77 = vector.shape_cast %74 : vector<8x4xf32> to vector<1x8x4xf32>
    tpu.vector_store %arg9[%c1_45, %c0_46, %c0_47], %77 {strides = array<i32>} : memref<4x8x4xf32, #tpu.memory_space<vmem>>, vector<1x8x4xf32>,
    %c1_48 = arith.constant 1 : index
    %c0_49 = arith.constant 0 : index
    %c0_50 = arith.constant 0 : index
    %78 = vector.load %arg7[%c1_48, %c0_49, %c0_50] : memref<4x8x1xf32, #tpu.memory_space<vmem>>, vector<1x8x1xf32>
    %79 = vector.shape_cast %78 : vector<1x8x1xf32> to vector<8x1xf32>
    %80 = vector.shape_cast %53 : vector<8x1xf32> to vector<1x8x1xf32>
    tpu.vector_store %arg7[%c1_48, %c0_49, %c0_50], %80 {strides = array<i32>} : memref<4x8x1xf32, #tpu.memory_space<vmem>>, vector<1x8x1xf32>,
    %81 = vector.extract_strided_slice %4 {offsets = [0, 8], sizes = [8, 4], strides = [1, 1]} : vector<8x128xbf16> to vector<8x4xbf16>
    %82 = vector.extract_strided_slice %6 {offsets = [0, 8], sizes = [8, 4], strides = [1, 1]} : vector<8x128xbf16> to vector<8x4xbf16>
    %83 = vector.extract_strided_slice %8 {offsets = [0, 8], sizes = [8, 4], strides = [1, 1]} : vector<8x128xbf16> to vector<8x4xbf16>
    %cst_51 = arith.constant dense<0.000000e+00> : vector<8x8xf32>
    %84 = tpu.matmul %81, %82, %cst_51 {dimension_numbers = #tpu.dot_dimension_numbers<[1], [1], [0], [0], [0, 0, 1, 0], [], []>} : vector<8x4xbf16>, vector<8x4xbf16>, vector<8x8xf32> -> vector<8x8xf32>
    %c2 = arith.constant 2 : index
    %c0_52 = arith.constant 0 : index
    %c0_53 = arith.constant 0 : index
    %85 = vector.load %arg7[%c2, %c0_52, %c0_53] : memref<4x8x1xf32, #tpu.memory_space<vmem>>, vector<1x8x1xf32>
    %86 = vector.shape_cast %85 : vector<1x8x1xf32> to vector<8x1xf32>
    %cst_54 = arith.constant dense<0xFF800000> : vector<8xf32>
    %87 = vector.multi_reduction <maximumf>, %84, %cst_54 [1] : vector<8x8xf32> to vector<8xf32>
    %88 = vector.shape_cast %87 : vector<8xf32> to vector<8x1xf32>
    %89 = arith.maximumf %86, %88 : vector<8x1xf32>
    %90 = arith.subf %86, %89 : vector<8x1xf32>
    %91 = math.exp %90 : vector<8x1xf32>
    %92 = vector.broadcast %89 : vector<8x1xf32> to vector<8x8xf32>
    %93 = arith.subf %84, %92 : vector<8x8xf32>
    %94 = math.exp %93 : vector<8x8xf32>
    %c2_55 = arith.constant 2 : index
    %c0_56 = arith.constant 0 : index
    %c0_57 = arith.constant 0 : index
    %95 = vector.load %arg8[%c2_55, %c0_56, %c0_57] : memref<4x8x1xf32, #tpu.memory_space<vmem>>, vector<1x8x1xf32>
    %96 = vector.shape_cast %95 : vector<1x8x1xf32> to vector<8x1xf32>
    %97 = arith.mulf %91, %96 : vector<8x1xf32>
    %cst_58 = arith.constant dense<0.000000e+00> : vector<8xf32>
    %98 = vector.multi_reduction <add>, %94, %cst_58 [1] : vector<8x8xf32> to vector<8xf32>
    %99 = vector.shape_cast %98 : vector<8xf32> to vector<8x1xf32>
    %100 = arith.addf %97, %99 : vector<8x1xf32>
    %c2_59 = arith.constant 2 : index
    %c0_60 = arith.constant 0 : index
    %c0_61 = arith.constant 0 : index
    %101 = vector.load %arg8[%c2_59, %c0_60, %c0_61] : memref<4x8x1xf32, #tpu.memory_space<vmem>>, vector<1x8x1xf32>
    %102 = vector.shape_cast %101 : vector<1x8x1xf32> to vector<8x1xf32>
    %103 = vector.shape_cast %100 : vector<8x1xf32> to vector<1x8x1xf32>
    tpu.vector_store %arg8[%c2_59, %c0_60, %c0_61], %103 {strides = array<i32>} : memref<4x8x1xf32, #tpu.memory_space<vmem>>, vector<1x8x1xf32>,
    %c2_62 = arith.constant 2 : index
    %c0_63 = arith.constant 0 : index
    %c0_64 = arith.constant 0 : index
    %104 = vector.load %arg9[%c2_62, %c0_63, %c0_64] : memref<4x8x4xf32, #tpu.memory_space<vmem>>, vector<1x8x4xf32>
    %105 = vector.shape_cast %104 : vector<1x8x4xf32> to vector<8x4xf32>
    %106 = vector.broadcast %91 : vector<8x1xf32> to vector<8x4xf32>
    %107 = arith.mulf %106, %105 : vector<8x4xf32>
    %108 = arith.truncf %94 : vector<8x8xf32> to vector<8x8xbf16>
    %cst_65 = arith.constant dense<0.000000e+00> : vector<8x4xf32>
    %109 = tpu.matmul %108, %83, %cst_65 {dimension_numbers = #tpu.dot_dimension_numbers<[1], [0], [0], [1], [0, 0, 1, 1], [], []>} : vector<8x8xbf16>, vector<8x4xbf16>, vector<8x4xf32> -> vector<8x4xf32>
    %110 = arith.addf %107, %109 : vector<8x4xf32>
    %c2_66 = arith.constant 2 : index
    %c0_67 = arith.constant 0 : index
    %c0_68 = arith.constant 0 : index
    %111 = vector.load %arg9[%c2_66, %c0_67, %c0_68] : memref<4x8x4xf32, #tpu.memory_space<vmem>>, vector<1x8x4xf32>
    %112 = vector.shape_cast %111 : vector<1x8x4xf32> to vector<8x4xf32>
    %113 = vector.shape_cast %110 : vector<8x4xf32> to vector<1x8x4xf32>
    tpu.vector_store %arg9[%c2_66, %c0_67, %c0_68], %113 {strides = array<i32>} : memref<4x8x4xf32, #tpu.memory_space<vmem>>, vector<1x8x4xf32>,
    %c2_69 = arith.constant 2 : index
    %c0_70 = arith.constant 0 : index
    %c0_71 = arith.constant 0 : index
    %114 = vector.load %arg7[%c2_69, %c0_70, %c0_71] : memref<4x8x1xf32, #tpu.memory_space<vmem>>, vector<1x8x1xf32>
    %115 = vector.shape_cast %114 : vector<1x8x1xf32> to vector<8x1xf32>
    %116 = vector.shape_cast %89 : vector<8x1xf32> to vector<1x8x1xf32>
    tpu.vector_store %arg7[%c2_69, %c0_70, %c0_71], %116 {strides = array<i32>} : memref<4x8x1xf32, #tpu.memory_space<vmem>>, vector<1x8x1xf32>,
    %117 = vector.extract_strided_slice %4 {offsets = [0, 12], sizes = [8, 4], strides = [1, 1]} : vector<8x128xbf16> to vector<8x4xbf16>
    %118 = vector.extract_strided_slice %6 {offsets = [0, 12], sizes = [8, 4], strides = [1, 1]} : vector<8x128xbf16> to vector<8x4xbf16>
    %119 = vector.extract_strided_slice %8 {offsets = [0, 12], sizes = [8, 4], strides = [1, 1]} : vector<8x128xbf16> to vector<8x4xbf16>
    %cst_72 = arith.constant dense<0.000000e+00> : vector<8x8xf32>
    %120 = tpu.matmul %117, %118, %cst_72 {dimension_numbers = #tpu.dot_dimension_numbers<[1], [1], [0], [0], [0, 0, 1, 0], [], []>} : vector<8x4xbf16>, vector<8x4xbf16>, vector<8x8xf32> -> vector<8x8xf32>
    %c3 = arith.constant 3 : index
    %c0_73 = arith.constant 0 : index
    %c0_74 = arith.constant 0 : index
    %121 = vector.load %arg7[%c3, %c0_73, %c0_74] : memref<4x8x1xf32, #tpu.memory_space<vmem>>, vector<1x8x1xf32>
    %122 = vector.shape_cast %121 : vector<1x8x1xf32> to vector<8x1xf32>
    %cst_75 = arith.constant dense<0xFF800000> : vector<8xf32>
    %123 = vector.multi_reduction <maximumf>, %120, %cst_75 [1] : vector<8x8xf32> to vector<8xf32>
    %124 = vector.shape_cast %123 : vector<8xf32> to vector<8x1xf32>
    %125 = arith.maximumf %122, %124 : vector<8x1xf32>
    %126 = arith.subf %122, %125 : vector<8x1xf32>
    %127 = math.exp %126 : vector<8x1xf32>
    %128 = vector.broadcast %125 : vector<8x1xf32> to vector<8x8xf32>
    %129 = arith.subf %120, %128 : vector<8x8xf32>
    %130 = math.exp %129 : vector<8x8xf32>
    %c3_76 = arith.constant 3 : index
    %c0_77 = arith.constant 0 : index
    %c0_78 = arith.constant 0 : index
    %131 = vector.load %arg8[%c3_76, %c0_77, %c0_78] : memref<4x8x1xf32, #tpu.memory_space<vmem>>, vector<1x8x1xf32>
    %132 = vector.shape_cast %131 : vector<1x8x1xf32> to vector<8x1xf32>
    %133 = arith.mulf %127, %132 : vector<8x1xf32>
    %cst_79 = arith.constant dense<0.000000e+00> : vector<8xf32>
    %134 = vector.multi_reduction <add>, %130, %cst_79 [1] : vector<8x8xf32> to vector<8xf32>
    %135 = vector.shape_cast %134 : vector<8xf32> to vector<8x1xf32>
    %136 = arith.addf %133, %135 : vector<8x1xf32>
    %c3_80 = arith.constant 3 : index
    %c0_81 = arith.constant 0 : index
    %c0_82 = arith.constant 0 : index
    %137 = vector.load %arg8[%c3_80, %c0_81, %c0_82] : memref<4x8x1xf32, #tpu.memory_space<vmem>>, vector<1x8x1xf32>
    %138 = vector.shape_cast %137 : vector<1x8x1xf32> to vector<8x1xf32>
    %139 = vector.shape_cast %136 : vector<8x1xf32> to vector<1x8x1xf32>
    tpu.vector_store %arg8[%c3_80, %c0_81, %c0_82], %139 {strides = array<i32>} : memref<4x8x1xf32, #tpu.memory_space<vmem>>, vector<1x8x1xf32>,
    %c3_83 = arith.constant 3 : index
    %c0_84 = arith.constant 0 : index
    %c0_85 = arith.constant 0 : index
    %140 = vector.load %arg9[%c3_83, %c0_84, %c0_85] : memref<4x8x4xf32, #tpu.memory_space<vmem>>, vector<1x8x4xf32>
    %141 = vector.shape_cast %140 : vector<1x8x4xf32> to vector<8x4xf32>
    %142 = vector.broadcast %127 : vector<8x1xf32> to vector<8x4xf32>
    %143 = arith.mulf %142, %141 : vector<8x4xf32>
    %144 = arith.truncf %130 : vector<8x8xf32> to vector<8x8xbf16>
    %cst_86 = arith.constant dense<0.000000e+00> : vector<8x4xf32>
    %145 = tpu.matmul %144, %119, %cst_86 {dimension_numbers = #tpu.dot_dimension_numbers<[1], [0], [0], [1], [0, 0, 1, 1], [], []>} : vector<8x8xbf16>, vector<8x4xbf16>, vector<8x4xf32> -> vector<8x4xf32>
    %146 = arith.addf %143, %145 : vector<8x4xf32>
    %c3_87 = arith.constant 3 : index
    %c0_88 = arith.constant 0 : index
    %c0_89 = arith.constant 0 : index
    %147 = vector.load %arg9[%c3_87, %c0_88, %c0_89] : memref<4x8x4xf32, #tpu.memory_space<vmem>>, vector<1x8x4xf32>
    %148 = vector.shape_cast %147 : vector<1x8x4xf32> to vector<8x4xf32>
    %149 = vector.shape_cast %146 : vector<8x4xf32> to vector<1x8x4xf32>
    tpu.vector_store %arg9[%c3_87, %c0_88, %c0_89], %149 {strides = array<i32>} : memref<4x8x4xf32, #tpu.memory_space<vmem>>, vector<1x8x4xf32>,
    %c3_90 = arith.constant 3 : index
    %c0_91 = arith.constant 0 : index
    %c0_92 = arith.constant 0 : index
    %150 = vector.load %arg7[%c3_90, %c0_91, %c0_92] : memref<4x8x1xf32, #tpu.memory_space<vmem>>, vector<1x8x1xf32>
    %151 = vector.shape_cast %150 : vector<1x8x1xf32> to vector<8x1xf32>
    %152 = vector.shape_cast %125 : vector<8x1xf32> to vector<1x8x1xf32>
    tpu.vector_store %arg7[%c3_90, %c0_91, %c0_92], %152 {strides = array<i32>} : memref<4x8x1xf32, #tpu.memory_space<vmem>>, vector<1x8x1xf32>,
    %c0_i32_93 = arith.constant 0 : i32
    %153 = arith.cmpi eq, %arg2, %c0_i32_93 : i32
    %154 = arith.extui %153 : i1 to i32
    %c0_i32_94 = arith.constant 0 : i32
    %155 = arith.cmpi ne, %154, %c0_i32_94 : i32
    scf.if %155 {
      %cst_95 = arith.constant 0.000000e+00 : bf16
      %156 = vector.broadcast %cst_95 : bf16 to vector<8x128xbf16>
      %c0_96 = arith.constant 0 : index
      %c0_97 = arith.constant 0 : index
      %c0_98 = arith.constant 0 : index
      %157 = vector.load %arg6[%c0_96, %c0_97, %c0_98] : memref<1x8x128xbf16, #tpu.memory_space<vmem>>, vector<1x8x128xbf16>
      %158 = vector.shape_cast %157 : vector<1x8x128xbf16> to vector<8x128xbf16>
      %159 = vector.shape_cast %156 : vector<8x128xbf16> to vector<1x8x128xbf16>
      tpu.vector_store %arg6[%c0_96, %c0_97, %c0_98], %159 {strides = array<i32>} : memref<1x8x128xbf16, #tpu.memory_space<vmem>>, vector<1x8x128xbf16>,
      %c0_99 = arith.constant 0 : index
      %c0_100 = arith.constant 0 : index
      %c0_101 = arith.constant 0 : index
      %160 = vector.load %arg8[%c0_99, %c0_100, %c0_101] : memref<4x8x1xf32, #tpu.memory_space<vmem>>, vector<1x8x1xf32>
      %161 = vector.shape_cast %160 : vector<1x8x1xf32> to vector<8x1xf32>
      %162 = tpu.reciprocal %161 {approx = true} : vector<8x1xf32> -> vector<8x1xf32>
      %c0_102 = arith.constant 0 : index
      %c0_103 = arith.constant 0 : index
      %c0_104 = arith.constant 0 : index
      %163 = vector.load %arg9[%c0_102, %c0_103, %c0_104] : memref<4x8x4xf32, #tpu.memory_space<vmem>>, vector<1x8x4xf32>
      %164 = vector.shape_cast %163 : vector<1x8x4xf32> to vector<8x4xf32>
      %165 = vector.broadcast %162 : vector<8x1xf32> to vector<8x4xf32>
      %166 = arith.mulf %164, %165 : vector<8x4xf32>
      %167 = arith.truncf %166 : vector<8x4xf32> to vector<8x4xbf16>
      %c0_105 = arith.constant 0 : index
      %c0_106 = arith.constant 0 : index
      %c0_107 = arith.constant 0 : index
      %168 = vector.load %arg6[%c0_105, %c0_106, %c0_107] : memref<1x8x128xbf16, #tpu.memory_space<vmem>>, vector<1x8x4xbf16>
      %169 = vector.shape_cast %168 : vector<1x8x4xbf16> to vector<8x4xbf16>
      %170 = vector.shape_cast %167 : vector<8x4xbf16> to vector<1x8x4xbf16>
      tpu.vector_store %arg6[%c0_105, %c0_106, %c0_107], %170 {strides = array<i32>} : memref<1x8x128xbf16, #tpu.memory_space<vmem>>, vector<1x8x4xbf16>,
      %c1_108 = arith.constant 1 : index
      %c0_109 = arith.constant 0 : index
      %c0_110 = arith.constant 0 : index
      %171 = vector.load %arg8[%c1_108, %c0_109, %c0_110] : memref<4x8x1xf32, #tpu.memory_space<vmem>>, vector<1x8x1xf32>
      %172 = vector.shape_cast %171 : vector<1x8x1xf32> to vector<8x1xf32>
      %173 = tpu.reciprocal %172 {approx = true} : vector<8x1xf32> -> vector<8x1xf32>
      %c1_111 = arith.constant 1 : index
      %c0_112 = arith.constant 0 : index
      %c0_113 = arith.constant 0 : index
      %174 = vector.load %arg9[%c1_111, %c0_112, %c0_113] : memref<4x8x4xf32, #tpu.memory_space<vmem>>, vector<1x8x4xf32>
      %175 = vector.shape_cast %174 : vector<1x8x4xf32> to vector<8x4xf32>
      %176 = vector.broadcast %173 : vector<8x1xf32> to vector<8x4xf32>
      %177 = arith.mulf %175, %176 : vector<8x4xf32>
      %178 = arith.truncf %177 : vector<8x4xf32> to vector<8x4xbf16>
      %c0_114 = arith.constant 0 : index
      %c0_115 = arith.constant 0 : index
      %c4 = arith.constant 4 : index
      %179 = vector.load %arg6[%c0_114, %c0_115, %c4] : memref<1x8x128xbf16, #tpu.memory_space<vmem>>, vector<1x8x4xbf16>
      %180 = vector.shape_cast %179 : vector<1x8x4xbf16> to vector<8x4xbf16>
      %181 = vector.shape_cast %178 : vector<8x4xbf16> to vector<1x8x4xbf16>
      tpu.vector_store %arg6[%c0_114, %c0_115, %c4], %181 {strides = array<i32>} : memref<1x8x128xbf16, #tpu.memory_space<vmem>>, vector<1x8x4xbf16>,
      %c2_116 = arith.constant 2 : index
      %c0_117 = arith.constant 0 : index
      %c0_118 = arith.constant 0 : index
      %182 = vector.load %arg8[%c2_116, %c0_117, %c0_118] : memref<4x8x1xf32, #tpu.memory_space<vmem>>, vector<1x8x1xf32>
      %183 = vector.shape_cast %182 : vector<1x8x1xf32> to vector<8x1xf32>
      %184 = tpu.reciprocal %183 {approx = true} : vector<8x1xf32> -> vector<8x1xf32>
      %c2_119 = arith.constant 2 : index
      %c0_120 = arith.constant 0 : index
      %c0_121 = arith.constant 0 : index
      %185 = vector.load %arg9[%c2_119, %c0_120, %c0_121] : memref<4x8x4xf32, #tpu.memory_space<vmem>>, vector<1x8x4xf32>
      %186 = vector.shape_cast %185 : vector<1x8x4xf32> to vector<8x4xf32>
      %187 = vector.broadcast %184 : vector<8x1xf32> to vector<8x4xf32>
      %188 = arith.mulf %186, %187 : vector<8x4xf32>
      %189 = arith.truncf %188 : vector<8x4xf32> to vector<8x4xbf16>
      %c0_122 = arith.constant 0 : index
      %c0_123 = arith.constant 0 : index
      %c8 = arith.constant 8 : index
      %190 = vector.load %arg6[%c0_122, %c0_123, %c8] : memref<1x8x128xbf16, #tpu.memory_space<vmem>>, vector<1x8x4xbf16>
      %191 = vector.shape_cast %190 : vector<1x8x4xbf16> to vector<8x4xbf16>
      %192 = vector.shape_cast %189 : vector<8x4xbf16> to vector<1x8x4xbf16>
      tpu.vector_store %arg6[%c0_122, %c0_123, %c8], %192 {strides = array<i32>} : memref<1x8x128xbf16, #tpu.memory_space<vmem>>, vector<1x8x4xbf16>,
      %c3_124 = arith.constant 3 : index
      %c0_125 = arith.constant 0 : index
      %c0_126 = arith.constant 0 : index
      %193 = vector.load %arg8[%c3_124, %c0_125, %c0_126] : memref<4x8x1xf32, #tpu.memory_space<vmem>>, vector<1x8x1xf32>
      %194 = vector.shape_cast %193 : vector<1x8x1xf32> to vector<8x1xf32>
      %195 = tpu.reciprocal %194 {approx = true} : vector<8x1xf32> -> vector<8x1xf32>
      %c3_127 = arith.constant 3 : index
      %c0_128 = arith.constant 0 : index
      %c0_129 = arith.constant 0 : index
      %196 = vector.load %arg9[%c3_127, %c0_128, %c0_129] : memref<4x8x4xf32, #tpu.memory_space<vmem>>, vector<1x8x4xf32>
      %197 = vector.shape_cast %196 : vector<1x8x4xf32> to vector<8x4xf32>
      %198 = vector.broadcast %195 : vector<8x1xf32> to vector<8x4xf32>
      %199 = arith.mulf %197, %198 : vector<8x4xf32>
      %200 = arith.truncf %199 : vector<8x4xf32> to vector<8x4xbf16>
      %c0_130 = arith.constant 0 : index
      %c0_131 = arith.constant 0 : index
      %c12 = arith.constant 12 : index
      %201 = vector.load %arg6[%c0_130, %c0_131, %c12] : memref<1x8x128xbf16, #tpu.memory_space<vmem>>, vector<1x8x4xbf16>
      %202 = vector.shape_cast %201 : vector<1x8x4xbf16> to vector<8x4xbf16>
      %203 = vector.shape_cast %200 : vector<8x4xbf16> to vector<1x8x4xbf16>
      tpu.vector_store %arg6[%c0_130, %c0_131, %c12], %203 {strides = array<i32>} : memref<1x8x128xbf16, #tpu.memory_space<vmem>>, vector<1x8x4xbf16>,
    } else {
    }
    return
  }
  func.func @transform_0(%arg0: i32, %arg1: i32, %arg2: i32) -> (i32, i32, i32) {
    %c0_i32 = arith.constant 0 : i32
    %c0_i32_0 = arith.constant 0 : i32
    return %arg0, %arg1, %c0_i32 : i32, i32, i32
  }
  func.func @transform_1(%arg0: i32, %arg1: i32, %arg2: i32) -> (i32, i32, i32) {
    %c1_i32 = arith.constant 1 : i32
    %c0_i32 = arith.constant 0 : i32
    return %arg0, %arg2, %c1_i32 : i32, i32, i32
  }
  func.func @transform_2(%arg0: i32, %arg1: i32, %arg2: i32) -> (i32, i32, i32) {
    %c2_i32 = arith.constant 2 : i32
    %c0_i32 = arith.constant 0 : i32
    return %arg0, %arg2, %c2_i32 : i32, i32, i32
  }
  func.func @transform_3(%arg0: i32, %arg1: i32, %arg2: i32) -> (i32, i32, i32) {
    %c0_i32 = arith.constant 0 : i32
    %c0_i32_0 = arith.constant 0 : i32
    return %arg0, %arg1, %c0_i32 : i32, i32, i32
  }
}

</mosaic_0001>

<bundles_post_ra>
// kernel: attention_forward.5
= control target key start
LH: loop header
LB: loop body
LE: loop exit
PB: predicated region body
PF: predicated region fallthrough
CT: control target
= control target key end

     0   :  { %s212_s1 = inlined_call_operand.vmem [shape: bf16[128,128], index: 1, kind: input, shape index: {}]   ;;  %s213_s2 = inlined_call_operand.vmem [shape: f32[1,128], index: 2, kind: input, shape index: {}]   ;;  %s214_s0 = inlined_call_operand.vmem [shape: bf16[16,128], index: 0, kind: input, shape index: {}]   ;;  %s215_s3 = inlined_call_operand.vmem [shape: f32[16,128], index: 3, kind: output, shape index: {}]  }
   0x1   :  { %v154_v0 = vld [vmem:[%s212_s1 + $0x38] sm:$0xff]  ;;  %v153_v1 = vld [vmem:[%s212_s1 + $0x30] sm:$0xff]  ;;  %v152_v2 = vld [vmem:[%s212_s1 + $0x28] sm:$0xff] }
   0x2   :  { %90 = vmatpush.bf16.msra.mxu0 %v154_v0  ;;  %v151_v3 = vld [vmem:[%s212_s1 + $0x20] sm:$0xff]  ;;  %v150_v4 = vld [vmem:[%s212_s1 + $0x18] sm:$0xff]  ;;  %v149_v5 = vld [vmem:[%s212_s1 + $0x10] sm:$0xff] }
   0x3   :  { %v148_v6 = vld [vmem:[%s212_s1 + $0x8] sm:$0xff]  ;;  %v147_v7 = vld [vmem:[%s212_s1] sm:$0xff] }
   0x4   :  { %v146_v8 = vld [vmem:[%s214_s0] sm:$0xff] }
   0x5   :  { %v155_v9 = vld [vmem:[%s213_s2] ss:$0 sm:$0xff] }
   0x6   :  { %91 = vmatpush.bf16.msra.mxu0 %v153_v1 }
   0xa   :  { %92 = vmatpush.bf16.msra.mxu0 %v152_v2 }
   0xe   :  { %93 = vmatpush.bf16.msra.mxu0 %v151_v3 }
  0x12   :  { %94 = vmatpush.bf16.msra.mxu0 %v150_v4 }
  0x16   :  { %95 = vmatpush.bf16.msra.mxu0 %v149_v5 }
  0x1a   :  { %96 = vmatpush.bf16.msra.mxu0 %v148_v6 }
  0x1e   :  { %97 = vmatpush.bf16.msra.mxu0 %v147_v7 }
  0x21   :  { %98 = vmatmul.bf16.vlgmr.msra.gmra.mxu0 %v146_v8 }
  0x9e   :  { %v99_v10 = vpop.f32.mrf.mxu0 }
  0x9f   :  { %v100_v11 = vadd.f32 %v155_v9, %v99_v10 }
  0xa1   :  { %104 = vst [vmem:[%s215_s3] sm:$0xff] %v100_v11 }
  0xa6   :  { %v101_v12 = vpop.f32.mrf.mxu0 }
  0xa7   :  { %v102_v13 = vadd.f32 %v155_v9, %v101_v12 }
  0xa9   :  { %105 = vst [vmem:[%s215_s3 + $0x8] sm:$0xff] %v102_v13 }

// kernel: attention_forward.3
= control target key start
LH: loop header
LB: loop body
LE: loop exit
PB: predicated region body
PF: predicated region fallthrough
CT: control target
= control target key end

     0   :  { %s551_s1 = inlined_call_operand.vmem [shape: bf16[128,384], index: 1, kind: input, shape index: {}]   ;;  %s552_s0 = inlined_call_operand.vmem [shape: bf16[16,128], index: 0, kind: input, shape index: {}]   ;;  %s553_s2 = inlined_call_operand.vmem [shape: f32[1,384], index: 2, kind: input, shape index: {}]   ;;  %s554_s3 = inlined_call_operand.vmem [shape: bf16[16,384], index: 3, kind: output, shape index: {}]  }
   0x1   :  { %v334_v0 = vld [vmem:[%s551_s1 + $0xa8] sm:$0xf]  ;;  %v367_v1 = vld [vmem:[%s551_s1 + $0xb0] sm:$0xf0]  ;;  %v366_v2 = vld [vmem:[%s551_s1 + $0xac] sm:$0xf] }
   0x2   :  { %v335_v3 = vor.u32 %v367_v1, %v334_v0  ;;  %v336_v4 = vld [vmem:[%s551_s1 + $0xb4] sm:$0xf0]  ;;  %v342_v5 = vld [vmem:[%s551_s1 + $0xb0] sm:$0xf]  ;;  %v368_v6 = vld [vmem:[%s551_s1 + $0xb8] sm:$0xf0] }
   0x3   :  { %v339_v7 = vor.u32 %v366_v2, %v336_v4  ;;  %v343_v8 = vor.u32 %v368_v6, %v342_v5  ;;  %v322_v9 = vld [vmem:[%s551_s1 + $0x90] sm:$0xf]  ;;  %v364_v10 = vld [vmem:[%s551_s1 + $0x98] sm:$0xf0]  ;;  %v363_v11 = vld [vmem:[%s551_s1 + $0x94] sm:$0xf] }
   0x4   :  { %190 = vmatpush.bf16.msra.mxu0 %v335_v3  ;;  %v323_v12 = vor.u32 %v364_v10, %v322_v9  ;;  %v324_v13 = vld [vmem:[%s551_s1 + $0x9c] sm:$0xf0]  ;;  %v330_v14 = vld [vmem:[%s551_s1 + $0x98] sm:$0xf]  ;;  %v365_v15 = vld [vmem:[%s551_s1 + $0xa0] sm:$0xf0] }
   0x5   :  { %204 = vmatpush.bf16.msra.mxu1 %v339_v7  ;;  %218 = vmatpush.bf16.msra.mxu2 %v343_v8  ;;  %v327_v16 = vor.u32 %v363_v11, %v324_v13  ;;  %v331_v17 = vor.u32 %v365_v15, %v330_v14  ;;  %v310_v18 = vld [vmem:[%s551_s1 + $0x78] sm:$0xf]  ;;  %v361_v19 = vld [vmem:[%s551_s1 + $0x80] sm:$0xf0]  ;;  %v360_v20 = vld [vmem:[%s551_s1 + $0x7c] sm:$0xf] }
   0x6   :  { %v312_v21 = vld [vmem:[%s551_s1 + $0x84] sm:$0xf0]  ;;  %v318_v22 = vld [vmem:[%s551_s1 + $0x80] sm:$0xf]  ;;  %v362_v23 = vld [vmem:[%s551_s1 + $0x88] sm:$0xf0]  ;;  %v311_v24 = vor.u32 %v361_v19, %v310_v18 }
   0x7   :  { %v315_v25 = vor.u32 %v360_v20, %v312_v21  ;;  %v319_v26 = vor.u32 %v362_v23, %v318_v22  ;;  %v298_v27 = vld [vmem:[%s551_s1 + $0x60] sm:$0xf]  ;;  %v358_v28 = vld [vmem:[%s551_s1 + $0x68] sm:$0xf0]  ;;  %v357_v29 = vld [vmem:[%s551_s1 + $0x64] sm:$0xf] }
   0x8   :  { %191 = vmatpush.bf16.msra.mxu0 %v323_v12  ;;  %v300_v30 = vld [vmem:[%s551_s1 + $0x6c] sm:$0xf0]  ;;  %v306_v31 = vld [vmem:[%s551_s1 + $0x68] sm:$0xf]  ;;  %v359_v32 = vld [vmem:[%s551_s1 + $0x70] sm:$0xf0]  ;;  %v299_v33 = vor.u32 %v358_v28, %v298_v27 }
   0x9   :  { %205 = vmatpush.bf16.msra.mxu1 %v327_v16  ;;  %219 = vmatpush.bf16.msra.mxu2 %v331_v17  ;;  %v303_v34 = vor.u32 %v357_v29, %v300_v30  ;;  %v307_v35 = vor.u32 %v359_v32, %v306_v31  ;;  %v286_v36 = vld [vmem:[%s551_s1 + $0x48] sm:$0xf]  ;;  %v355_v37 = vld [vmem:[%s551_s1 + $0x50] sm:$0xf0]  ;;  %v354_v38 = vld [vmem:[%s551_s1 + $0x4c] sm:$0xf] }
   0xa   :  { %v288_v39 = vld [vmem:[%s551_s1 + $0x54] sm:$0xf0]  ;;  %v294_v40 = vld [vmem:[%s551_s1 + $0x50] sm:$0xf]  ;;  %v356_v41 = vld [vmem:[%s551_s1 + $0x58] sm:$0xf0]  ;;  %v287_v42 = vor.u32 %v355_v37, %v286_v36 }
   0xb   :  { %v291_v43 = vor.u32 %v354_v38, %v288_v39  ;;  %v295_v44 = vor.u32 %v356_v41, %v294_v40  ;;  %v274_v45 = vld [vmem:[%s551_s1 + $0x30] sm:$0xf]  ;;  %v352_v46 = vld [vmem:[%s551_s1 + $0x38] sm:$0xf0]  ;;  %v351_v47 = vld [vmem:[%s551_s1 + $0x34] sm:$0xf] }
   0xc   :  { %192 = vmatpush.bf16.msra.mxu0 %v311_v24  ;;  %v276_v48 = vld [vmem:[%s551_s1 + $0x3c] sm:$0xf0]  ;;  %v282_v49 = vld [vmem:[%s551_s1 + $0x38] sm:$0xf]  ;;  %v353_v50 = vld [vmem:[%s551_s1 + $0x40] sm:$0xf0]  ;;  %v275_v51 = vor.u32 %v352_v46, %v274_v45 }
   0xd   :  { %206 = vmatpush.bf16.msra.mxu1 %v315_v25  ;;  %220 = vmatpush.bf16.msra.mxu2 %v319_v26  ;;  %v279_v52 = vor.u32 %v351_v47, %v276_v48  ;;  %v283_v53 = vor.u32 %v353_v50, %v282_v49  ;;  %v262_v54 = vld [vmem:[%s551_s1 + $0x18] sm:$0xf]  ;;  %v349_v55 = vld [vmem:[%s551_s1 + $0x20] sm:$0xf0]  ;;  %v348_v56 = vld [vmem:[%s551_s1 + $0x1c] sm:$0xf] }
   0xe   :  { %v264_v57 = vld [vmem:[%s551_s1 + $0x24] sm:$0xf0]  ;;  %v270_v58 = vld [vmem:[%s551_s1 + $0x20] sm:$0xf]  ;;  %v350_v59 = vld [vmem:[%s551_s1 + $0x28] sm:$0xf0]  ;;  %v263_v60 = vor.u32 %v349_v55, %v262_v54 }
   0xf   :  { %v267_v61 = vor.u32 %v348_v56, %v264_v57  ;;  %v271_v62 = vor.u32 %v350_v59, %v270_v58  ;;  %v250_v63 = vld [vmem:[%s551_s1] sm:$0xf]  ;;  %v346_v0 = vld [vmem:[%s551_s1 + $0x8] sm:$0xf0]  ;;  %v345_v1 = vld [vmem:[%s551_s1 + $0x4] sm:$0xf] }
  0x10   :  { %193 = vmatpush.bf16.msra.mxu0 %v299_v33  ;;  %v252_v2 = vld [vmem:[%s551_s1 + $0xc] sm:$0xf0]  ;;  %v258_v3 = vld [vmem:[%s551_s1 + $0x8] sm:$0xf]  ;;  %v347_v4 = vld [vmem:[%s551_s1 + $0x10] sm:$0xf0]  ;;  %v251_v5 = vor.u32 %v346_v0, %v250_v63 }
  0x11   :  { %207 = vmatpush.bf16.msra.mxu1 %v303_v34  ;;  %221 = vmatpush.bf16.msra.mxu2 %v307_v35  ;;  %v255_v6 = vor.u32 %v345_v1, %v252_v2  ;;  %v259_v7 = vor.u32 %v347_v4, %v258_v3  ;;  %v344_v8 = vld [vmem:[%s552_s0] sm:$0xff] }
  0x12   :  { %v48_v9 = vld [vmem:[%s553_s2] sm:$0x7] }
  0x13   :  { %v50_v10 = vperm.slane %v48_v9, 0  ;;  %v51_v11 = vperm.slane %v48_v9, 1  ;;  %v52_v17 = vperm.slane %v48_v9, 2 }
  0x14   :  { %194 = vmatpush.bf16.msra.mxu0 %v287_v42 }
  0x15   :  { %208 = vmatpush.bf16.msra.mxu1 %v291_v43  ;;  %222 = vmatpush.bf16.msra.mxu2 %v295_v44 }
  0x18   :  { %195 = vmatpush.bf16.msra.mxu0 %v275_v51 }
  0x19   :  { %209 = vmatpush.bf16.msra.mxu1 %v279_v52  ;;  %223 = vmatpush.bf16.msra.mxu2 %v283_v53 }
  0x1c   :  { %196 = vmatpush.bf16.msra.mxu0 %v263_v60 }
  0x1d   :  { %210 = vmatpush.bf16.msra.mxu1 %v267_v61  ;;  %224 = vmatpush.bf16.msra.mxu2 %v271_v62 }
  0x20   :  { %197 = vmatpush.bf16.msra.mxu0 %v251_v5 }
  0x21   :  { %211 = vmatpush.bf16.msra.mxu1 %v255_v6  ;;  %225 = vmatpush.bf16.msra.mxu2 %v259_v7 }
  0x23   :  { %198 = vmatmul.bf16.vlgmr.msra.gmra.mxu0 %v344_v8 }
  0x24   :  { %212 = vmatmul.bf16.vlgmr.msra.gmra.mxu1 %v344_v8  ;;  %226 = vmatmul.bf16.vlgmr.msra.gmra.mxu2 %v344_v8 }
  0xa0   :  { %v199_v12 = vpop.f32.mrf.mxu0 }
  0xa1   :  { %v200_v13 = vadd.f32 %v199_v12, %v50_v10  ;;  %v213_v14 = vpop.f32.mrf.mxu1 }
  0xa2   :  { %v214_v15 = vadd.f32 %v213_v14, %v51_v11 }
  0xa4   :  { %v232_v16 = vpack.c.bf16 %v214_v15, %v200_v13 }
  0xa6   :  { %236 = vst [vmem:[%s554_s3] sm:$0xff] %v232_v16 }
  0xa7   :  { %v227_v18 = vpop.f32.mrf.mxu2 }
  0xa8   :  { %v228_v19 = vadd.f32 %v227_v18, %v52_v17  ;;  %v201_v20 = vpop.f32.mrf.mxu0 }
  0xa9   :  { %v202_v21 = vadd.f32 %v201_v20, %v50_v10  ;;  %v215_v22 = vpop.f32.mrf.mxu1 }
  0xaa   :  { %v233_v23 = vpack.c.bf16 %v228_v19, %v228_v19  ;;  %v216_v24 = vadd.f32 %v215_v22, %v51_v11 }
  0xac   :  { %237 = vst [vmem:[%s554_s3 + $0x8] sm:$0xf] %v233_v23  ;;  %v234_v25 = vpack.c.bf16 %v216_v24, %v202_v21 }
  0xae   :  { %238 = vst [vmem:[%s554_s3 + $0xc] sm:$0xff] %v234_v25 }
  0xaf   :  { %v229_v26 = vpop.f32.mrf.mxu2 }
  0xb0   :  { %v230_v27 = vadd.f32 %v229_v26, %v52_v17 }
  0xb2   :  { %v235_v28 = vpack.c.bf16 %v230_v27, %v230_v27 }
  0xb4   :  { %239 = vst [vmem:[%s554_s3 + $0x14] sm:$0xf] %v235_v28 }

// kernel: attention_forward.4
= control target key start
LH: loop header
LB: loop body
LE: loop exit
PB: predicated region body
PF: predicated region fallthrough
CT: control target
= control target key end

     0   :  { %s964_s12 = smov 0   ;;  %s966_s13 = smov 0   ;;  %s1099_s0 = inlined_call_operand.vmem [shape: bf16[2,8,384], index: 0, kind: input, shape index: {}, may-alias: {0,1,2}]   ;;  %s1100_s1 = inlined_call_operand.vmem [shape: bf16[2,8,384], index: 1, kind: input, shape index: {}, may-alias: {0,1,2}]   ;;  %s1101_s2 = inlined_call_operand.vmem [shape: bf16[2,8,384], index: 2, kind: input, shape index: {}, may-alias: {0,1,2}]   ;;  %s1102_s3 = inlined_call_operand.vmem [shape: bf16[2,8,128], index: 3, kind: output, shape index: {}]  }
   0x1   :  { %s968_s14 = smov 0  }
   0x2 LB: > { %s32_s15 = sadd.s32 1, %s929_s13  ;;  %p833_p0 = scmp.ge.s32.totalorder %s933_s14, 1  ;;  %s933_s14 = sphi %s968_s14, %s13_s14   ;;  %s929_s13 = sphi %s966_s13, %s1104_s13   ;;  %s925_s12 = sphi %s964_s12, %s1103_s12  }
   0x3   : > { %p34_p1 = scmp.ge.s32.totalorder %s32_s15, 2  ;;  %p198_p2 = scmp.lt.s32.totalorder %s933_s14, 3 }
   0x5   : > { %s1106_s15 = smov (%p34_p1, %s32_s15), 0  ;;  %p199_p3 = pnand %p833_p0, %p198_p2 }
   0x6   : > { %p248_p4 = scmp.lt.s32.totalorder (!%p199_p3), %s925_s12, 1  ;;  %s936_s23 = smov (!%p199_p3), 120  }
   0x7   : > { %202 = sbr.rel (%p199_p3) target bundleno = 1131 (0x46b), region = 32  ;;  %s937_s24 = smov (!%p199_p3), 116  }
   0x8   : > { %s938_s25 = smov (!%p199_p3), 124   ;;  %s941_s6 = smov (!%p199_p3), 4  }
   0x9   : > { %s942_s7 = smov (!%p199_p3), 12   ;;  %s943_s8 = smov (!%p199_p3), 8  }
   0xc   : > { %s1108_s12 = smov (!%p248_p4, %s925_s12), 1  ;;  %vm298_vm0 = vcmask 31744   ;;  %vm289_vm1 = vcmask 7168   ;;  %v935_v3 = vmov -inf   ;;  %vm327_vm2 = vcmask 64512  }
   0xd   : > { %s985_s16 = smul.u32 12, %s1108_s12  ;;  %290 = vst.msk [vmem:[#allocation2] sm:$0xff] %vm289_vm1, %v935_v3  ;;  %s837_s26 = sshll.u32 %s1108_s12, 2  ;;  %v939_v11 = vmov 0   ;;  %v940_v12 = vmov 0.0   ;;  %vm362_vm3 = vcmask 1043456  }
   0xe   : > { %291 = vst.msk [vmem:[#allocation2 + $0x8] sm:$0xff] %vm289_vm1, %v935_v3  ;;  %s1010_s29 = scalar_lea.vmem %s1102_s3, %s837_s26  ;;  %884 = vset.pattern.permute.xlu1 %v939_v11  ;;  %885 = vset.pattern.permute.xlu2 %v939_v11  ;;  %vm648_vm4 = vcmask 27648   ;;  %vm664_vm5 = vcmask 60448   ;;  %vm680_vm6 = vcmask 93248   ;;  %vm696_vm7 = vcmask 126048  }
   0xf   : > { %s769_s19 = scalar_lea.vmem %s1100_s1, %s985_s16  ;;  %s256_s22 = scalar_lea.vmem %s1099_s0, %s985_s16  ;;  %292 = vst.msk [vmem:[#allocation2 + $0x10] sm:$0xff] %vm289_vm1, %v935_v3  ;;  %886 = vset.pattern.permute.xlu0 %v939_v11 }
  0x10   : > { %v838_v0 = vld [vmem:[%s769_s19 + $0x4] sm:$0xf]  ;;  %v303_v2 = vld [vmem:[%s256_s22] sm:$0xf]  ;;  %293 = vst.msk [vmem:[#allocation2 + $0x18] sm:$0xff] %vm289_vm1, %v935_v3  ;;  %s775_s5 = scalar_lea.vmem %s1101_s2, %s985_s16 }
  0x11   : > { %v311_v1 = vsel %vm298_vm0, %v838_v0, 0  ;;  %v388_v4 = vunpack.c.l.b16 %v838_v0  ;;  %v383_v9 = vunpack.c.l.b16 %v303_v2  ;;  %637 = vst [vmem:[%s1010_s29] sm:$0xf] %v939_v11  ;;  %v839_v20 = vld [vmem:[%s775_s5 + $0x8] sm:$0xf] }
  0x12   : > { %320 = vmatpush.bf16.xpose.msra.mxu0 %v311_v1  ;;  %294 = vst.msk [vmem:[#allocation3] sm:$0xff] %vm289_vm1, %v940_v12  ;;  %v364_v21 = vsel %vm362_vm3, %v839_v20, 0  ;;  %v446_v43 = vunpack.c.l.b16 %v839_v20 }
  0x13   : > { %v389_v5 = vpack.c.b16 %v388_v4, %v388_v4  ;;  %v384_v10 = vpack.c.b16 %v383_v9, %v383_v9  ;;  %295 = vst.msk [vmem:[#allocation3 + $0x8] sm:$0xff] %vm289_vm1, %v940_v12  ;;  %373 = vmatpush.bf16.msra.mxu1 %v364_v21 }
  0x14   : > { %296 = vst.msk [vmem:[#allocation3 + $0x10] sm:$0xff] %vm289_vm1, %v940_v12  ;;  %v1021_v13 = vld [vmem:[#allocation2] sm:$0xff]  ;;  %v447_v44 = vpack.c.b16 %v446_v43, %v446_v43 }
  0x15   : > { %474 = vrot.lane.b32.xlu2 %v389_v5, %s936_s23  ;;  %297 = vst.msk [vmem:[#allocation3 + $0x18] sm:$0xff] %vm289_vm1, %v940_v12  ;;  %v412_v51 = vld [vmem:[#allocation2 + $0x8] sm:$0xff] }
  0x16   : > { %299 = vst.msk [vmem:[#allocation4] sm:$0xff] %vm298_vm0, %v940_v12  ;;  %v496_v54 = vld [vmem:[#allocation2 + $0x10] sm:$0xff] }
  0x17   : > { %300 = vst.msk [vmem:[#allocation4 + $0x8] sm:$0xff] %vm298_vm0, %v940_v12  ;;  %v577_v47 = vld [vmem:[#allocation2 + $0x18] sm:$0xff] }
  0x18   : > { %301 = vst.msk [vmem:[#allocation4 + $0x10] sm:$0xff] %vm298_vm0, %v940_v12 }
  0x19   : > { %840 = vmatmul.msk.bf16.vlgmr.msra.gmra.mxu0 %vm298_vm0, %v303_v2  ;;  %302 = vst.msk [vmem:[#allocation4 + $0x18] sm:$0xff] %vm298_vm0, %v940_v12  ;;  %v343_v1 = vld [vmem:[#allocation3] sm:$0xff] }
  0x1d   : > { %555 = vrot.lane.b32.xlu2 %v389_v5, %s937_s24 }
  0x25   : > { %553 = vrot.lane.b32.xlu2 %v384_v10, %s937_s24 }
  0x6f   : > { %v475_v19 = vpop.permute.xlu2 %474 }
  0x70   : > { %v480_v22 = vsel %vm298_vm0, %v475_v19, 0 }
  0x71   : > { %489 = vmatpush.bf16.xpose.msrb.mxu1 %v480_v22  ;;  %v351_v22 = vld [vmem:[#allocation4] sm:$0xff] }
  0x77   : > { %v556_v23 = vpop.permute.xlu2 %555 }
  0x78   : > { %v561_v24 = vsel %vm298_vm0, %v556_v23, 0 }
  0x79   : > { %570 = vmatpush.bf16.xpose.msrb.mxu0 %v561_v24 }
  0x7f   : > { %v554_v25 = vpop.permute.xlu2 %553 }
  0x80   : > { %846 = vmatmul.msk.bf16.vlgmr.msrb.gmra.mxu0 %vm298_vm0, %v554_v25 }
  0x96   : > { %v322_v6 = vpop.f32.mrf.mxu0 }
  0x97   : > { %v328_v7 = vsel %vm327_vm2, %v322_v6, -inf }
  0x98   : > { %329 = vmax.xlane.f32.xlu0 %v328_v7 }
  0x9e   : > { %v324_v8 = vpop.f32.mrf.mxu0 }
  0xac   : > { %390 = vrot.lane.b32.xlu0 %v389_v5, %s938_s25 }
  0xfd   : > { %v1045_v33 = vpop.f32.mrf.mxu0 }
  0xfe   : > { %v578_v34 = vsel %vm327_vm2, %v1045_v33, -inf }
  0xff   : > { %579 = vmax.xlane.f32.xlu0 %v578_v34 }
 0x105   : > { %v574_v35 = vpop.f32.mrf.mxu0 }
 0x10b   : > { %v330_v14 = vpop.xlane.xlu0 %329 }
 0x10c   : > { %v1024_v15 = vmax.f32 %v1021_v13, %v330_v14 }
 0x10e   : > { %v332_v16 = vsub.f32 %v1021_v13, %v1024_v15  ;;  %381 = vst.msk [vmem:[#allocation2] sm:$0xff] %vm289_vm1, %v1024_v15  ;;  %337 = vperm.xlu1 %884, %v1024_v15  }
 0x110   : > { %v333_v56 = vmul.f32 1.442695, %v332_v16 }
 0x116   : > { %385 = vrot.lane.b32.xlu1 %v384_v10, %s938_s25 }
 0x11e   : > { %472 = vrot.lane.b32.xlu1 %v384_v10, %s936_s23  ;;  %v391_v17 = vpop.permute.xlu0 %390 }
 0x11f   : > { %v396_v18 = vsel %vm298_vm0, %v391_v17, 0 }
 0x120   : > { %405 = vmatpush.bf16.xpose.msra.mxu2 %v396_v18 }
 0x172   : > { %v580_v48 = vpop.xlane.xlu0 %579 }
 0x173   : > { %v581_v49 = vmax.f32 %v577_v47, %v580_v48 }
 0x175   : > { %v582_v50 = vsub.f32 %v577_v47, %v581_v49  ;;  %633 = vst.msk [vmem:[#allocation2 + $0x18] sm:$0xff] %vm289_vm1, %v581_v49 }
 0x177   : > { %v583_v21 = vmul.f32 1.442695, %v582_v50 }
 0x180   : > { %v338_v26 = vpop.permute.xlu1 %337 }
 0x181   : > { %v340_v27 = vsub.f32 %v322_v6, %v338_v26 }
 0x183   : > { %v341_v28 = vmul.f32 1.442695, %v340_v27 }
 0x185   : > { %887 = vpow2.f32 %v341_v28 }
 0x186   : > { %889 = vpow2.f32 %v333_v56 }
 0x188   : > { %v386_v29 = vpop.permute.xlu1 %385 }
 0x189   : > { %842 = vmatmul.msk.bf16.vlgmr.msra.gmra.mxu2 %vm298_vm0, %v386_v29 }
 0x18b   : > { %v888_v30 = vpop.eup %887 }
 0x18c   : > { %v358_v31 = vpack.c.bf16 %v888_v30, %v888_v30  ;;  %v345_v46 = vsel %vm327_vm2, %v888_v30, 0.0  ;;  %v890_v61 = vpop.eup %889 }
 0x18d   : > { %v344_v3 = vmul.f32 %v890_v61, %v343_v1 }
 0x18e   : > { %841 = vmatmul.msk.bf16.vlgmr.msra.gmra.mxu1 %vm327_vm2, %v358_v31 }
 0x190   : > { %v473_v32 = vpop.permute.xlu1 %472 }
 0x19e   : > { %844 = vmatmul.msk.bf16.vlgmr.msrb.gmra.mxu1 %vm298_vm0, %v473_v32 }
 0x20b   : > { %v1049_v36 = vpop.f32.mrf.mxu1 }
 0x20c   : > { %v407_v37 = vpop.f32.mrf.mxu2 }
 0x20d   : > { %v413_v38 = vsel %vm327_vm2, %v407_v37, -inf }
 0x20e   : > { %414 = vmax.xlane.f32.xlu1 %v413_v38 }
 0x213   : > { %v377_v39 = vpop.f32.mrf.mxu1 }
 0x214   : > { %v409_v40 = vpop.f32.mrf.mxu2 }
 0x21b   : > { %v1052_v41 = vpop.f32.mrf.mxu1 }
 0x21c   : > { %v497_v42 = vsel %vm327_vm2, %v1052_v41, -inf }
 0x21d   : > { %498 = vmax.xlane.f32.xlu2 %v497_v42 }
 0x223   : > { %v493_v45 = vpop.f32.mrf.mxu1 }
 0x227   : > { %448 = vrot.lane.b32.xlu1 %v447_v44, %s938_s25 }
 0x22f   : > { %529 = vrot.lane.b32.xlu1 %v447_v44, %s936_s23 }
 0x259   : > { %346 = vadd.xlane.f32.xlu1 %v345_v46  ;;  %v437_v46 = vld [vmem:[#allocation4 + $0x8] sm:$0xff] }
 0x281   : > { %v415_v52 = vpop.xlane.xlu1 %414 }
 0x282   : > { %v416_v53 = vmax.f32 %v412_v51, %v415_v52 }
 0x284   : > { %471 = vst.msk [vmem:[#allocation2 + $0x8] sm:$0xff] %vm289_vm1, %v416_v53  ;;  %422 = vperm.xlu2 %885, %v416_v53   ;;  %v417_v59 = vsub.f32 %v412_v51, %v416_v53  ;;  %v602_v53 = vld [vmem:[#allocation4 + $0x18] sm:$0xff] }
 0x286   : > { %v418_v60 = vmul.f32 1.442695, %v417_v59 }
 0x288   : > { %891 = vpow2.f32 %v418_v60 }
 0x28c   : > { %587 = vperm.xlu2 %885, %v581_v49  }
 0x28e   : > { %v892_v62 = vpop.eup %891 }
 0x290   : > { %v499_v55 = vpop.xlane.xlu2 %498 }
 0x291   : > { %v500_v57 = vmax.f32 %v496_v54, %v499_v55 }
 0x293   : > { %v501_v58 = vsub.f32 %v496_v54, %v500_v57  ;;  %552 = vst.msk [vmem:[#allocation2 + $0x10] sm:$0xff] %vm289_vm1, %v500_v57  ;;  %506 = vperm.xlu0 %886, %v500_v57  }
 0x294   : > { %610 = vrot.lane.b32.xlu2 %v447_v44, %s937_s24 }
 0x295   : > { %v502_v27 = vmul.f32 1.442695, %v501_v58 }
 0x299   : > { %v449_v63 = vpop.permute.xlu1 %448 }
 0x29a   : > { %v454_v2 = vsel %vm362_vm3, %v449_v63, 0 }
 0x29b   : > { %463 = vmatpush.bf16.msra.mxu3 %v454_v2 }
 0x29c   : > { %354 = vperm.xlu2 %885, %v890_v61   ;;  %v513_v61 = vld [vmem:[#allocation3 + $0x10] sm:$0xff] }
 0x2a1   : > { %v530_v0 = vpop.permute.xlu1 %529 }
 0x2a2   : > { %v535_v15 = vsel %vm362_vm3, %v530_v0, 0 }
 0x2a3   : > { %544 = vmatpush.bf16.msrb.mxu3 %v535_v15 }
 0x2a4   : > { %440 = vperm.xlu2 %885, %v892_v62  }
 0x2cc   : > { %v347_v4 = vpop.xlane.xlu1 %346 }
 0x2cd   : > { %v348_v5 = vadd.f32 %v347_v4, %v344_v3 }
 0x2cf   : > { %350 = vst.msk [vmem:[#allocation3] sm:$0xff] %vm289_vm1, %v348_v5 }
 0x2d6   : > { %v638_v35 = vld [vmem:[#allocation3] sm:$0xff] }
 0x2de   : > { %v423_v6 = vpop.permute.xlu2 %422 }
 0x2df   : > { %v425_v7 = vsub.f32 %v407_v37, %v423_v6  ;;  %v429_v37 = vld [vmem:[#allocation3 + $0x8] sm:$0xff]  ;;  %v521_v6 = vld [vmem:[#allocation4 + $0x10] sm:$0xff] }
 0x2e0   : > { %v430_v38 = vmul.f32 %v892_v62, %v429_v37 }
 0x2e1   : > { %v426_v8 = vmul.f32 1.442695, %v425_v7 }
 0x2e3   : > { %893 = vpow2.f32 %v426_v8 }
 0x2e6   : > { %v588_v9 = vpop.permute.xlu2 %587 }
 0x2e7   : > { %v590_v10 = vsub.f32 %v1045_v33, %v588_v9 }
 0x2e9   : > { %v894_v11 = vpop.eup %893  ;;  %v591_v12 = vmul.f32 1.442695, %v590_v10 }
 0x2ea   : > { %v431_v13 = vsel %vm327_vm2, %v894_v11, 0.0  ;;  %v444_v14 = vpack.c.bf16 %v894_v11, %v894_v11 }
 0x2eb   : > { %895 = vpow2.f32 %v591_v12  ;;  %432 = vadd.xlane.f32.xlu0 %v431_v13 }
 0x2ec   : > { %843 = vmatmul.msk.bf16.vlgmr.msra.gmra.mxu3 %vm327_vm2, %v444_v14  ;;  %897 = vpow2.f32 %v583_v21 }
 0x2ed   : > { %899 = vpow2.f32 %v502_v27 }
 0x2ee   : > { %v611_v16 = vpop.permute.xlu2 %610 }
 0x2ef   : > { %v616_v17 = vsel %vm362_vm3, %v611_v16, 0 }
 0x2f0   : > { %625 = vmatpush.bf16.msrb.mxu2 %v616_v17 }
 0x2f1   : > { %v896_v18 = vpop.eup %895 }
 0x2f2   : > { %v596_v19 = vsel %vm327_vm2, %v896_v18, 0.0  ;;  %v609_v20 = vpack.c.bf16 %v896_v18, %v896_v18  ;;  %v898_v26 = vpop.eup %897 }
 0x2f3   : > { %597 = vadd.xlane.f32.xlu1 %v596_v19  ;;  %v900_v31 = vpop.eup %899 }
 0x2f4   : > { %847 = vmatmul.msk.bf16.vlgmr.msrb.gmra.mxu2 %vm327_vm2, %v609_v20  ;;  %v514_v62 = vmul.f32 %v900_v31, %v513_v61 }
 0x2f6   : > { %v355_v23 = vpop.permute.xlu2 %354 }
 0x2f7   : > { %v357_v24 = vmul.f32 %v355_v23, %v351_v22 }
 0x2f9   : > { %v379_v25 = vadd.f32 %v1049_v36, %v357_v24 }
 0x2fb   : > { %380 = vst.msk [vmem:[#allocation4] sm:$0xff] %vm298_vm0, %v379_v25 }
 0x2fe   : > { %v441_v47 = vpop.permute.xlu2 %440 }
 0x2ff   : > { %605 = vperm.xlu0 %886, %v898_v26   ;;  %v443_v48 = vmul.f32 %v441_v47, %v437_v46 }
 0x302   : > { %v640_v1 = vld [vmem:[#allocation4] sm:$0xff] }
 0x305   : > { %v507_v28 = vpop.permute.xlu0 %506 }
 0x306   : > { %v509_v29 = vsub.f32 %v1052_v41, %v507_v28  ;;  %v594_v41 = vld [vmem:[#allocation3 + $0x18] sm:$0xff] }
 0x307   : > { %v595_v42 = vmul.f32 %v898_v26, %v594_v41 }
 0x308   : > { %v510_v30 = vmul.f32 1.442695, %v509_v29 }
 0x30a   : > { %901 = vpow2.f32 %v510_v30 }
 0x30b   : > { %903 = vrcp.f32 %v638_v35 }
 0x30c   : > { %524 = vperm.xlu1 %884, %v900_v31  }
 0x310   : > { %v902_v32 = vpop.eup %901 }
 0x311   : > { %v515_v33 = vsel %vm327_vm2, %v902_v32, 0.0  ;;  %v528_v34 = vpack.c.bf16 %v902_v32, %v902_v32  ;;  %v904_v36 = vpop.eup %903 }
 0x312   : > { %516 = vadd.xlane.f32.xlu2 %v515_v33 }
 0x313   : > { %845 = vmatmul.msk.bf16.vlgmr.msrb.gmra.mxu3 %vm327_vm2, %v528_v34 }
 0x32a   : > { %643 = vperm.xlu2 %885, %v904_v36  }
 0x35e   : > { %v433_v39 = vpop.xlane.xlu0 %432 }
 0x35f   : > { %v434_v40 = vadd.f32 %v433_v39, %v430_v38 }
 0x361   : > { %435 = vst.msk [vmem:[#allocation3 + $0x8] sm:$0xff] %vm289_vm1, %v434_v40 }
 0x366   : > { %v598_v43 = vpop.xlane.xlu1 %597 }
 0x367   : > { %v599_v44 = vadd.f32 %v598_v43, %v595_v42 }
 0x368   : > { %v650_v45 = vld [vmem:[#allocation3 + $0x8] sm:$0xff] }
 0x369   : > { %600 = vst.msk [vmem:[#allocation3 + $0x18] sm:$0xff] %vm289_vm1, %v599_v44  ;;  %905 = vrcp.f32 %v650_v45 }
 0x36f   : > { %v906_v49 = vpop.eup %905  ;;  %v465_v50 = vpop.f32.mrf.mxu3 }
 0x370   : > { %v469_v51 = vadd.f32 %v465_v50, %v443_v48  ;;  %655 = vperm.xlu0 %886, %v906_v49   ;;  %v682_v52 = vld [vmem:[#allocation3 + $0x18] sm:$0xff] }
 0x371   : > { %907 = vrcp.f32 %v682_v52  ;;  %v606_v54 = vpop.permute.xlu0 %605 }
 0x372   : > { %470 = vst.msk [vmem:[#allocation4 + $0x8] sm:$0xff] %vm298_vm0, %v469_v51  ;;  %v608_v55 = vmul.f32 %v606_v54, %v602_v53 }
 0x377   : > { %v908_v56 = vpop.eup %907  ;;  %v467_v57 = vpop.f32.mrf.mxu3 }
 0x378   : > { %v627_v58 = vpop.f32.mrf.mxu2  ;;  %687 = vperm.xlu0 %886, %v908_v56  }
 0x379   : > { %v631_v59 = vadd.f32 %v627_v58, %v608_v55  ;;  %v652_v13 = vld [vmem:[#allocation4 + $0x8] sm:$0xff] }
 0x37b   : > { %632 = vst.msk [vmem:[#allocation4 + $0x18] sm:$0xff] %vm298_vm0, %v631_v59 }
 0x37e   : > { %v525_v7 = vpop.permute.xlu1 %524 }
 0x37f   : > { %v527_v8 = vmul.f32 %v525_v7, %v521_v6 }
 0x380   : > { %v629_v60 = vpop.f32.mrf.mxu2 }
 0x382   : > { %v684_v17 = vld [vmem:[#allocation4 + $0x18] sm:$0xff] }
 0x385   : > { %v517_v63 = vpop.xlane.xlu2 %516 }
 0x386   : > { %v518_v0 = vadd.f32 %v517_v63, %v514_v62 }
 0x388   : > { %519 = vst.msk [vmem:[#allocation3 + $0x10] sm:$0xff] %vm289_vm1, %v518_v0 }
 0x38d   : > { %v644_v2 = vpop.permute.xlu2 %643 }
 0x38e   : > { %v646_v3 = vmul.f32 %v644_v2, %v640_v1 }
 0x38f   : > { %v666_v4 = vld [vmem:[#allocation3 + $0x10] sm:$0xff] }
 0x390   : > { %v647_v5 = vpack.c.bf16 %v646_v3, %v646_v3  ;;  %909 = vrcp.f32 %v666_v4 }
 0x392   : > { %649 = vst.msk [vmem:[%s1010_s29] sm:$0xf] %vm648_vm4, %v647_v5 }
 0x396   : > { %v910_v9 = vpop.eup %909  ;;  %v546_v10 = vpop.f32.mrf.mxu3 }
 0x397   : > { %v550_v11 = vadd.f32 %v546_v10, %v527_v8  ;;  %671 = vperm.xlu1 %884, %v910_v9  }
 0x399   : > { %551 = vst.msk [vmem:[#allocation4 + $0x10] sm:$0xff] %vm298_vm0, %v550_v11 }
 0x39e   : > { %v548_v12 = vpop.f32.mrf.mxu3 }
 0x3a0   : > { %v668_v21 = vld [vmem:[#allocation4 + $0x10] sm:$0xff] }
 0x3e2   : > { %v656_v14 = vpop.permute.xlu0 %655 }
 0x3e3   : > { %v658_v15 = vmul.f32 %v656_v14, %v652_v13 }
 0x3e5   : > { %v659_v16 = vpack.c.bf16 %v658_v15, %v658_v15 }
 0x3e7   : > { %661 = vrot.lane.b32.xlu1 %v659_v16, %s941_s6 }
 0x3ea   : > { %v688_v18 = vpop.permute.xlu0 %687 }
 0x3eb   : > { %v690_v19 = vmul.f32 %v688_v18, %v684_v17 }
 0x3ed   : > { %v691_v20 = vpack.c.bf16 %v690_v19, %v690_v19 }
 0x3ef   : > { %693 = vrot.lane.b32.xlu0 %v691_v20, %s942_s7 }
 0x409   : > { %v672_v22 = vpop.permute.xlu1 %671 }
 0x40a   : > { %v674_v23 = vmul.f32 %v672_v22, %v668_v21 }
 0x40c   : > { %v675_v24 = vpack.c.bf16 %v674_v23, %v674_v23 }
 0x40e   : > { %677 = vrot.lane.b32.xlu2 %v675_v24, %s943_s8 }
 0x459   : > { %v662_v25 = vpop.permute.xlu1 %661 }
 0x45a   : > { %665 = vst.msk [vmem:[%s1010_s29] sm:$0xf] %vm664_vm5, %v662_v25 }
 0x461   : > { %v694_v27 = vpop.permute.xlu0 %693 }
 0x468   : > { %v678_v26 = vpop.permute.xlu2 %677 }
 0x469   : > { %681 = vst.msk [vmem:[%s1010_s29] sm:$0xf] %vm680_vm6, %v678_v26 }
 0x46a   : > { %697 = vst.msk [vmem:[%s1010_s29] sm:$0xf] %vm696_vm7, %v694_v27 }
 0x46b PF: > { %s13_s14 = sadd.s32 1, %s933_s14   ;;  %s1103_s12 = smov %s929_s13 }
 0x46c   : > { %p10_p5 = scmp.ge.s32.totalorder %s13_s14, 4   ;;  %s1104_s13 = smov %s1106_s15 }
 0x46e   :  { %12 = sbr.rel (!%p10_p5) target bundleno = 2 (0x2), region = 85 }

</bundles_post_ra>
